<compile_context>
chip_gen: v7x
topology: tpu7x:2x2x1
jax: 0.10.0
libtpu: 0.0.40
codegen_flags: <defaults>
</compile_context>

<pallas_src>
import functools

import jax
import jax.numpy as jnp
from jax.experimental import pallas as pl
from jax.experimental.pallas import tpu as pltpu


def _ln(x, g, b, eps=1e-5):
    """LayerNorm with statistics kept in f32."""
    mu = jnp.mean(x, axis=-1, keepdims=True)
    var = jnp.mean((x - mu) ** 2, axis=-1, keepdims=True)
    return (x - mu) * jax.lax.rsqrt(var + eps) * g + b


def clip_encoder_kernel(num_heads,
                        x_ref, vec_ref, wqkv_ref, bqkv_ref, wo_ref,
                        w1_ref, b1_ref, w2_ref, lnfw_ref, lnfb_ref, bias_ref,
                        o_ref, ctx_acc):
    """One (batch-block, layer) grid step of the fused CLIP text encoder.

    grid = (B // Tb, L): batch axis "parallel", layer axis "arbitrary".
    The residual stream is carried across the layer axis in o_ref (resident
    output block, same block index for every l).
    """
    l = pl.program_id(1)
    Tb, S, D = x_ref.shape
    M = Tb * S
    Hd = D // num_heads

    @pl.when(l == 0)
    def _():
        o_ref[...] = x_ref[...]                    # load residual stream once

    x = o_ref[...].reshape(M, D)                   # (Tb*S, D) f32 residual

    vecs = vec_ref[0]                              # (8, D) packed per-layer vectors
    ln1w, ln1b = vecs[0:1], vecs[1:2]
    ln2w, ln2b = vecs[2:3], vecs[3:4]
    bo, b2 = vecs[4:5], vecs[5:6]

    # ---------------- causal self-attention (pre-LN) ----------------
    h = _ln(x, ln1w, ln1b)
    qkv = jnp.dot(h.astype(jnp.bfloat16), wqkv_ref[0],
                  preferred_element_type=jnp.float32) + bqkv_ref[0]   # (M, 3D)
    # NOTE: 1/sqrt(Hd) is already folded into the Q columns of wqkv / bqkv.
    qb = qkv[:, :D].astype(jnp.bfloat16).reshape(Tb, S, D)
    kb = qkv[:, D:2 * D].astype(jnp.bfloat16).reshape(Tb, S, D)
    vb = qkv[:, 2 * D:].astype(jnp.bfloat16).reshape(Tb, S, D)

    # Additive causal bias (0 / -1e9), hoisted broadcast (not per head).
    cbias = jnp.broadcast_to(bias_ref[...], (Tb, S, S))

    qk_dims = (((2,), (2,)), ((0,), (0,)))         # q @ k^T, batched over Tb
    pv_dims = (((2,), (1,)), ((0,), (0,)))         # p @ v,   batched over Tb

    # TODO(synk): replace the static per-head loop with a single head-batched
    # dot_general once the (S, H*Hd) -> (H, S, Hd) relayout is cheap on Mosaic.
    for hh in range(num_heads):
        sl = slice(hh * Hd, (hh + 1) * Hd)
        s = jax.lax.dot_general(qb[:, :, sl], kb[:, :, sl], qk_dims,
                                preferred_element_type=jnp.float32)   # (Tb,S,S)
        s = s + cbias
        s = s - jnp.max(s, axis=-1, keepdims=True)
        p = jnp.exp(s)
        p = p * pl.reciprocal(jnp.sum(p, axis=-1, keepdims=True), approx=True)
        ctx = jax.lax.dot_general(p.astype(jnp.bfloat16), vb[:, :, sl], pv_dims,
                                  preferred_element_type=jnp.float32)  # (Tb,S,Hd)
        ctx_acc[:, :, sl] = ctx.astype(jnp.bfloat16)

    attn = jnp.dot(ctx_acc[...].reshape(M, D), wo_ref[0],
                   preferred_element_type=jnp.float32) + bo
    x = x + attn                                   # residual add in f32

    # ---------------- MLP (pre-LN, quick-GELU) ----------------
    h2 = _ln(x, ln2w, ln2b)
    m = jnp.dot(h2.astype(jnp.bfloat16), w1_ref[0],
                preferred_element_type=jnp.float32) + b1_ref[0]
    m = m * jax.nn.sigmoid(1.702 * m)              # quick_gelu (EUP)
    m = jnp.dot(m.astype(jnp.bfloat16), w2_ref[0],
                preferred_element_type=jnp.float32) + b2
    x = x + m

    last = pl.num_programs(1) - 1

    @pl.when(l != last)
    def _():
        o_ref[...] = x.reshape(Tb, S, D)           # carry residual to next layer

    # -------- final LayerNorm fused into the last layer step --------
    @pl.when(l == last)
    def _():
        o_ref[...] = _ln(x, lnfw_ref[...], lnfb_ref[...]).reshape(Tb, S, D)


def _vmem_limit_bytes():
    """~3/4 of physical VMEM: ~96 MiB on v5e/v6e, ~48 MiB on v7x."""
    try:
        cap = int(getattr(pltpu.get_tpu_info(), "vmem_capacity_bytes", 0))
        if cap > 0:
            return cap * 3 // 4
    except Exception:
        pass
    return 48 * 1024 * 1024                        # conservative fallback


def clip_wrapper_forward(tokens, params, *, num_heads, batch_block=None):
    """ClipWrapper.forward with layer='last': returns last_hidden_state."""
    B, S = tokens.shape
    # Token-embedding gather + positional embedding: plain-JAX glue
    # (data-dependent gather, no clean Pallas equivalent at this scale).
    x = (params['tok_emb'][tokens] + params['pos_emb'][None, :S, :]
         ).astype(jnp.float32)
    D = x.shape[-1]
    L = params['wqkv'].shape[0]
    F = params['w1'].shape[-1]

    # Pad S to a multiple of 8 so (Tb,S,D) <-> (Tb*S,D) reshapes are
    # layout-preserving (real CLIP S=77).  Causal mask keeps pad keys
    # invisible to real queries; pad rows are sliced off the output.
    Sp = max(8, ((S + 7) // 8) * 8)
    if Sp != S:
        x = jnp.pad(x, ((0, 0), (0, Sp - S), (0, 0)))

    if batch_block is None:
        divs = [d for d in range(min(B, 8), 0, -1) if B % d == 0]
        # Prefer >=2 batch blocks (v7x has two TensorCores) while keeping a
        # batch block of >=2 rows to amortize the per-layer weight DMA.
        pref = [d for d in divs if d >= 2 and (B // d) >= 2]
        batch_block = (pref or divs)[0]
    Tb = batch_block
    assert B % Tb == 0, (B, Tb)

    # Additive causal bias, fetched once (constant index_map, resident).
    causal_bias = jnp.triu(jnp.full((Sp, Sp), -1e9, dtype=jnp.float32), k=1)

    kernel = functools.partial(clip_encoder_kernel, num_heads)

    def xmap(b, l):   # activation / output blocks: per batch block, resident over l
        return (b, 0, 0)

    def wmap(b, l):   # per-layer weight blocks: prefetch layer l
        return (l, 0, 0)

    def cmap(b, l):   # constants (final LN params, causal bias)
        return (0, 0)

    in_specs = [
        pl.BlockSpec((Tb, Sp, D), xmap),          # x
        pl.BlockSpec((1, 8, D), wmap),            # packed ln1/ln2/bo/b2 vectors
        pl.BlockSpec((1, D, 3 * D), wmap),        # wqkv (bf16, q-scale folded)
        pl.BlockSpec((1, 1, 3 * D), wmap),        # bqkv (q-scale folded)
        pl.BlockSpec((1, D, D), wmap),            # wo (bf16)
        pl.BlockSpec((1, D, F), wmap),            # w1 (bf16)
        pl.BlockSpec((1, 1, F), wmap),            # b1
        pl.BlockSpec((1, F, D), wmap),            # w2 (bf16)
        pl.BlockSpec((1, D), cmap),               # ln_f_w
        pl.BlockSpec((1, D), cmap),               # ln_f_b
        pl.BlockSpec((Sp, Sp), cmap),             # additive causal bias
    ]

    z = pl.pallas_call(
        kernel,
        out_shape=jax.ShapeDtypeStruct((B, Sp, D), jnp.float32),
        grid=(B // Tb, L),
        in_specs=in_specs,
        out_specs=pl.BlockSpec((Tb, Sp, D), xmap),
        scratch_shapes=[pltpu.VMEM((Tb, Sp, D), jnp.bfloat16)],  # attn context
        compiler_params=pltpu.CompilerParams(
            dimension_semantics=("parallel", "arbitrary"),
            vmem_limit_bytes=_vmem_limit_bytes()),
    )(x, params['vecs'], params['wqkv'], params['bqkv'], params['wo'],
      params['w1'], params['b1'], params['w2'],
      params['ln_f_w'], params['ln_f_b'], causal_bias)

    if Sp != S:
        z = z[:, :S, :]

    # TODO(synk): layer='pooled' / layer='hidden' branches of ClipWrapper and
    # the tokenizer padding attention_mask are not implemented.
    return z                                      # (B, S, D) last_hidden_state


def init_params(key, vocab, max_seq, d, mlp, n_layers, num_heads):
    kt, kp, kq, kk, kv_, ko, k1, k2, kb = jax.random.split(key, 9)
    bks = jax.random.split(kb, 6)

    def dense(k, *shape):
        return jax.random.normal(k, shape, jnp.float32) * 0.02

    def bias(k, *shape):
        return jax.random.normal(k, shape, jnp.float32) * 0.01

    scale = (d // num_heads) ** -0.5

    # Fold 1/sqrt(Hd) into the Q projection (weights + bias) at init time.
    wq = dense(kq, n_layers, d, d) * scale
    wk = dense(kk, n_layers, d, d)
    wv = dense(kv_, n_layers, d, d)
    bq = bias(bks[0], n_layers, 1, d) * scale
    bk = bias(bks[1], n_layers, 1, d)
    bv = bias(bks[2], n_layers, 1, d)

    ln1_w = jnp.ones((n_layers, 1, d), jnp.float32)
    ln1_b = jnp.zeros((n_layers, 1, d), jnp.float32)
    ln2_w = jnp.ones((n_layers, 1, d), jnp.float32)
    ln2_b = jnp.zeros((n_layers, 1, d), jnp.float32)
    bo = bias(bks[3], n_layers, 1, d)
    b2 = bias(bks[5], n_layers, 1, d)
    pad = jnp.zeros((n_layers, 2, d), jnp.float32)

    return {
        'tok_emb': dense(kt, vocab, d),
        'pos_emb': dense(kp, max_seq, d),
        'ln_f_w': jnp.ones((1, d), jnp.float32),
        'ln_f_b': jnp.zeros((1, d), jnp.float32),
        # Packed per-layer width-D vectors:
        # rows = [ln1_w, ln1_b, ln2_w, ln2_b, bo, b2, pad, pad]  -> (L, 8, D)
        'vecs': jnp.concatenate([ln1_w, ln1_b, ln2_w, ln2_b, bo, b2, pad],
                                axis=1),
        # Fused QKV projection, stored (D_in, 3*D_out), bf16, q-scale folded.
        'wqkv': jnp.concatenate([wq, wk, wv], axis=-1).astype(jnp.bfloat16),
        'bqkv': jnp.concatenate([bq, bk, bv], axis=-1),
        'wo': dense(ko, n_layers, d, d).astype(jnp.bfloat16),
        'w1': dense(k1, n_layers, d, mlp).astype(jnp.bfloat16),
        'b1': bias(bks[4], n_layers, 1, mlp),
        'w2': dense(k2, n_layers, mlp, d).astype(jnp.bfloat16),
    }


if __name__ == "__main__":
    B, S, D, H, F, L, V = 4, 8, 128, 4, 512, 2, 512

    key = jax.random.PRNGKey(0)
    k_tok, k_par = jax.random.split(key)
    tokens = jax.random.randint(k_tok, (B, S), 0, V, dtype=jnp.int32)
    params = init_params(k_par, V, S, D, F, L, num_heads=H)

    z = clip_wrapper_forward(tokens, params, num_heads=H)
    z = jax.block_until_ready(z)
    assert z.shape == (B, S, D), z.shape
    assert bool(jnp.all(jnp.isfinite(z)))
    print("KERNEL_OK")
</pallas_src>

<mosaic_0001>
module attributes {stable_mosaic.version = 11 : i64} {
  func.func @clip_encoder_kernel(%arg0: i32, %arg1: i32, %arg2: memref<2x8x128xf32, #tpu.memory_space<vmem>>, %arg3: memref<1x8x128xf32, #tpu.memory_space<vmem>>, %arg4: memref<1x128x384xbf16, #tpu.memory_space<vmem>>, %arg5: memref<1x1x384xf32, #tpu.memory_space<vmem>>, %arg6: memref<1x128x128xbf16, #tpu.memory_space<vmem>>, %arg7: memref<1x128x512xbf16, #tpu.memory_space<vmem>>, %arg8: memref<1x1x512xf32, #tpu.memory_space<vmem>>, %arg9: memref<1x512x128xbf16, #tpu.memory_space<vmem>>, %arg10: memref<1x128xf32, #tpu.memory_space<vmem>>, %arg11: memref<1x128xf32, #tpu.memory_space<vmem>>, %arg12: memref<8x8xf32, #tpu.memory_space<vmem>>, %arg13: memref<2x8x128xf32, #tpu.memory_space<vmem>>, %arg14: memref<2x8x128xbf16, #tpu.memory_space<vmem>>) attributes {dimension_semantics = [#tpu.dimension_semantics<parallel>, #tpu.dimension_semantics<arbitrary>], iteration_bounds = array<i64: 2, 2>, scalar_prefetch = 0 : i64, scratch_operands = 1 : i64, tpu.core_type = #tpu.core_type<tc>, window_params = [{transform_indices = @transform_0, window_bounds = array<i64: 2, 8, 128>}, {transform_indices = @transform_1, window_bounds = array<i64: 1, 8, 128>}, {transform_indices = @transform_2, window_bounds = array<i64: 1, 128, 384>}, {transform_indices = @transform_3, window_bounds = array<i64: 1, 1, 384>}, {transform_indices = @transform_4, window_bounds = array<i64: 1, 128, 128>}, {transform_indices = @transform_5, window_bounds = array<i64: 1, 128, 512>}, {transform_indices = @transform_6, window_bounds = array<i64: 1, 1, 512>}, {transform_indices = @transform_7, window_bounds = array<i64: 1, 512, 128>}, {pipeline_mode = #tpu.pipeline_mode<synchronous>, transform_indices = @transform_8, window_bounds = array<i64: 1, 128>}, {pipeline_mode = #tpu.pipeline_mode<synchronous>, transform_indices = @transform_9, window_bounds = array<i64: 1, 128>}, {pipeline_mode = #tpu.pipeline_mode<synchronous>, transform_indices = @transform_10, window_bounds = array<i64: 8, 8>}, {transform_indices = @transform_11, window_bounds = array<i64: 2, 8, 128>}]} {
    %c0_i32 = arith.constant 0 : i32
    %0 = arith.cmpi eq, %arg1, %c0_i32 : i32
    %1 = arith.extui %0 : i1 to i32
    %c0_i32_0 = arith.constant 0 : i32
    %2 = arith.cmpi ne, %1, %c0_i32_0 : i32
    scf.if %2 {
      %c0_72 = arith.constant 0 : index
      %c0_73 = arith.constant 0 : index
      %c0_74 = arith.constant 0 : index
      %190 = vector.load %arg2[%c0_72, %c0_73, %c0_74] : memref<2x8x128xf32, #tpu.memory_space<vmem>>, vector<2x8x128xf32>
      %c0_75 = arith.constant 0 : index
      %c0_76 = arith.constant 0 : index
      %c0_77 = arith.constant 0 : index
      %191 = vector.load %arg13[%c0_75, %c0_76, %c0_77] : memref<2x8x128xf32, #tpu.memory_space<vmem>>, vector<2x8x128xf32>
      tpu.vector_store %arg13[%c0_75, %c0_76, %c0_77], %190 {strides = array<i32>} : memref<2x8x128xf32, #tpu.memory_space<vmem>>, vector<2x8x128xf32>,
    } else {
    }
    %c0 = arith.constant 0 : index
    %c0_1 = arith.constant 0 : index
    %c0_2 = arith.constant 0 : index
    %3 = vector.load %arg13[%c0, %c0_1, %c0_2] : memref<2x8x128xf32, #tpu.memory_space<vmem>>, vector<2x8x128xf32>
    %4 = vector.shape_cast %3 : vector<2x8x128xf32> to vector<16x128xf32>
    %c0_3 = arith.constant 0 : index
    %c0_4 = arith.constant 0 : index
    %c0_5 = arith.constant 0 : index
    %5 = vector.load %arg3[%c0_3, %c0_4, %c0_5] : memref<1x8x128xf32, #tpu.memory_space<vmem>>, vector<1x8x128xf32>
    %6 = vector.shape_cast %5 : vector<1x8x128xf32> to vector<8x128xf32>
    %7 = vector.extract_strided_slice %6 {offsets = [0, 0], sizes = [1, 128], strides = [1, 1]} : vector<8x128xf32> to vector<1x128xf32>
    %8 = vector.extract_strided_slice %6 {offsets = [1, 0], sizes = [1, 128], strides = [1, 1]} : vector<8x128xf32> to vector<1x128xf32>
    %9 = vector.extract_strided_slice %6 {offsets = [2, 0], sizes = [1, 128], strides = [1, 1]} : vector<8x128xf32> to vector<1x128xf32>
    %10 = vector.extract_strided_slice %6 {offsets = [3, 0], sizes = [1, 128], strides = [1, 1]} : vector<8x128xf32> to vector<1x128xf32>
    %11 = vector.extract_strided_slice %6 {offsets = [4, 0], sizes = [1, 128], strides = [1, 1]} : vector<8x128xf32> to vector<1x128xf32>
    %12 = vector.extract_strided_slice %6 {offsets = [5, 0], sizes = [1, 128], strides = [1, 1]} : vector<8x128xf32> to vector<1x128xf32>
    %cst = arith.constant dense<0.000000e+00> : vector<16xf32>
    %13 = vector.multi_reduction <add>, %4, %cst [1] : vector<16x128xf32> to vector<16xf32>
    %14 = vector.shape_cast %13 : vector<16xf32> to vector<16x1xf32>
    %cst_6 = arith.constant 1.280000e+02 : f32
    %15 = vector.broadcast %cst_6 : f32 to vector<16x1xf32>
    %16 = arith.divf %14, %15 : vector<16x1xf32>
    %17 = vector.broadcast %16 : vector<16x1xf32> to vector<16x128xf32>
    %18 = arith.subf %4, %17 : vector<16x128xf32>
    %19 = arith.mulf %18, %18 : vector<16x128xf32>
    %cst_7 = arith.constant dense<0.000000e+00> : vector<16xf32>
    %20 = vector.multi_reduction <add>, %19, %cst_7 [1] : vector<16x128xf32> to vector<16xf32>
    %21 = vector.shape_cast %20 : vector<16xf32> to vector<16x1xf32>
    %cst_8 = arith.constant 1.280000e+02 : f32
    %22 = vector.broadcast %cst_8 : f32 to vector<16x1xf32>
    %23 = arith.divf %21, %22 : vector<16x1xf32>
    %24 = vector.broadcast %16 : vector<16x1xf32> to vector<16x128xf32>
    %25 = arith.subf %4, %24 : vector<16x128xf32>
    %cst_9 = arith.constant 9.99999974E-6 : f32
    %26 = vector.broadcast %cst_9 : f32 to vector<16x1xf32>
    %27 = arith.addf %23, %26 : vector<16x1xf32>
    %28 = math.rsqrt %27 : vector<16x1xf32>
    %29 = vector.broadcast %28 : vector<16x1xf32> to vector<16x128xf32>
    %30 = arith.mulf %25, %29 : vector<16x128xf32>
    %31 = vector.broadcast %7 : vector<1x128xf32> to vector<16x128xf32>
    %32 = arith.mulf %30, %31 : vector<16x128xf32>
    %33 = vector.broadcast %8 : vector<1x128xf32> to vector<16x128xf32>
    %34 = arith.addf %32, %33 : vector<16x128xf32>
    %35 = arith.truncf %34 : vector<16x128xf32> to vector<16x128xbf16>
    %c0_10 = arith.constant 0 : index
    %c0_11 = arith.constant 0 : index
    %c0_12 = arith.constant 0 : index
    %36 = vector.load %arg4[%c0_10, %c0_11, %c0_12] : memref<1x128x384xbf16, #tpu.memory_space<vmem>>, vector<1x128x384xbf16>
    %37 = vector.shape_cast %36 : vector<1x128x384xbf16> to vector<128x384xbf16>
    %cst_13 = arith.constant dense<0.000000e+00> : vector<16x384xf32>
    %38 = tpu.matmul %35, %37, %cst_13 {dimension_numbers = #tpu.dot_dimension_numbers<[1], [0], [0], [1], [0, 0, 1, 1], [], []>} : vector<16x128xbf16>, vector<128x384xbf16>, vector<16x384xf32> -> vector<16x384xf32>
    %c0_14 = arith.constant 0 : index
    %c0_15 = arith.constant 0 : index
    %c0_16 = arith.constant 0 : index
    %39 = vector.load %arg5[%c0_14, %c0_15, %c0_16] : memref<1x1x384xf32, #tpu.memory_space<vmem>>, vector<1x1x384xf32>
    %40 = vector.shape_cast %39 : vector<1x1x384xf32> to vector<1x384xf32>
    %41 = vector.broadcast %40 : vector<1x384xf32> to vector<16x384xf32>
    %42 = arith.addf %38, %41 : vector<16x384xf32>
    %43 = vector.extract_strided_slice %42 {offsets = [0, 0], sizes = [16, 128], strides = [1, 1]} : vector<16x384xf32> to vector<16x128xf32>
    %44 = arith.truncf %43 : vector<16x128xf32> to vector<16x128xbf16>
    %45 = vector.shape_cast %44 : vector<16x128xbf16> to vector<2x8x128xbf16>
    %46 = vector.extract_strided_slice %42 {offsets = [0, 128], sizes = [16, 128], strides = [1, 1]} : vector<16x384xf32> to vector<16x128xf32>
    %47 = arith.truncf %46 : vector<16x128xf32> to vector<16x128xbf16>
    %48 = vector.shape_cast %47 : vector<16x128xbf16> to vector<2x8x128xbf16>
    %49 = vector.extract_strided_slice %42 {offsets = [0, 256], sizes = [16, 128], strides = [1, 1]} : vector<16x384xf32> to vector<16x128xf32>
    %50 = arith.truncf %49 : vector<16x128xf32> to vector<16x128xbf16>
    %51 = vector.shape_cast %50 : vector<16x128xbf16> to vector<2x8x128xbf16>
    %c0_17 = arith.constant 0 : index
    %c0_18 = arith.constant 0 : index
    %52 = vector.load %arg12[%c0_17, %c0_18] : memref<8x8xf32, #tpu.memory_space<vmem>>, vector<8x8xf32>
    %53 = vector.shape_cast %52 : vector<8x8xf32> to vector<1x8x8xf32>
    %54 = vector.broadcast %53 : vector<1x8x8xf32> to vector<2x8x8xf32>
    %55 = vector.extract_strided_slice %45 {offsets = [0, 0, 0], sizes = [2, 8, 32], strides = [1, 1, 1]} : vector<2x8x128xbf16> to vector<2x8x32xbf16>
    %56 = vector.extract_strided_slice %48 {offsets = [0, 0, 0], sizes = [2, 8, 32], strides = [1, 1, 1]} : vector<2x8x128xbf16> to vector<2x8x32xbf16>
    %cst_19 = arith.constant dense<0.000000e+00> : vector<2x8x8xf32>
    %57 = tpu.matmul %55, %56, %cst_19 {dimension_numbers = #tpu.dot_dimension_numbers<[2], [2], [1], [1], [0, 0, 0, 1, 1, 1], [0], [0]>} : vector<2x8x32xbf16>, vector<2x8x32xbf16>, vector<2x8x8xf32> -> vector<2x8x8xf32>
    %58 = arith.addf %57, %54 : vector<2x8x8xf32>
    %cst_20 = arith.constant dense<0xFF800000> : vector<2x8xf32>
    %59 = vector.multi_reduction <maximumf>, %58, %cst_20 [2] : vector<2x8x8xf32> to vector<2x8xf32>
    %60 = vector.shape_cast %59 : vector<2x8xf32> to vector<2x8x1xf32>
    %61 = vector.broadcast %60 : vector<2x8x1xf32> to vector<2x8x8xf32>
    %62 = arith.subf %58, %61 : vector<2x8x8xf32>
    %63 = math.exp %62 : vector<2x8x8xf32>
    %cst_21 = arith.constant dense<0.000000e+00> : vector<2x8xf32>
    %64 = vector.multi_reduction <add>, %63, %cst_21 [2] : vector<2x8x8xf32> to vector<2x8xf32>
    %65 = vector.shape_cast %64 : vector<2x8xf32> to vector<2x8x1xf32>
    %66 = tpu.reciprocal %65 {approx = true} : vector<2x8x1xf32> -> vector<2x8x1xf32>
    %67 = vector.broadcast %66 : vector<2x8x1xf32> to vector<2x8x8xf32>
    %68 = arith.mulf %63, %67 : vector<2x8x8xf32>
    %69 = arith.truncf %68 : vector<2x8x8xf32> to vector<2x8x8xbf16>
    %70 = vector.extract_strided_slice %51 {offsets = [0, 0, 0], sizes = [2, 8, 32], strides = [1, 1, 1]} : vector<2x8x128xbf16> to vector<2x8x32xbf16>
    %cst_22 = arith.constant dense<0.000000e+00> : vector<2x8x32xf32>
    %71 = tpu.matmul %69, %70, %cst_22 {dimension_numbers = #tpu.dot_dimension_numbers<[2], [1], [1], [2], [0, 0, 0, 1, 1, 2], [0], [0]>} : vector<2x8x8xbf16>, vector<2x8x32xbf16>, vector<2x8x32xf32> -> vector<2x8x32xf32>
    %72 = arith.truncf %71 : vector<2x8x32xf32> to vector<2x8x32xbf16>
    %c0_23 = arith.constant 0 : index
    %c0_24 = arith.constant 0 : index
    %c0_25 = arith.constant 0 : index
    %73 = vector.load %arg14[%c0_23, %c0_24, %c0_25] : memref<2x8x128xbf16, #tpu.memory_space<vmem>>, vector<2x8x32xbf16>
    tpu.vector_store %arg14[%c0_23, %c0_24, %c0_25], %72 {strides = array<i32>} : memref<2x8x128xbf16, #tpu.memory_space<vmem>>, vector<2x8x32xbf16>,
    %74 = vector.extract_strided_slice %45 {offsets = [0, 0, 32], sizes = [2, 8, 32], strides = [1, 1, 1]} : vector<2x8x128xbf16> to vector<2x8x32xbf16>
    %75 = vector.extract_strided_slice %48 {offsets = [0, 0, 32], sizes = [2, 8, 32], strides = [1, 1, 1]} : vector<2x8x128xbf16> to vector<2x8x32xbf16>
    %cst_26 = arith.constant dense<0.000000e+00> : vector<2x8x8xf32>
    %76 = tpu.matmul %74, %75, %cst_26 {dimension_numbers = #tpu.dot_dimension_numbers<[2], [2], [1], [1], [0, 0, 0, 1, 1, 1], [0], [0]>} : vector<2x8x32xbf16>, vector<2x8x32xbf16>, vector<2x8x8xf32> -> vector<2x8x8xf32>
    %77 = arith.addf %76, %54 : vector<2x8x8xf32>
    %cst_27 = arith.constant dense<0xFF800000> : vector<2x8xf32>
    %78 = vector.multi_reduction <maximumf>, %77, %cst_27 [2] : vector<2x8x8xf32> to vector<2x8xf32>
    %79 = vector.shape_cast %78 : vector<2x8xf32> to vector<2x8x1xf32>
    %80 = vector.broadcast %79 : vector<2x8x1xf32> to vector<2x8x8xf32>
    %81 = arith.subf %77, %80 : vector<2x8x8xf32>
    %82 = math.exp %81 : vector<2x8x8xf32>
    %cst_28 = arith.constant dense<0.000000e+00> : vector<2x8xf32>
    %83 = vector.multi_reduction <add>, %82, %cst_28 [2] : vector<2x8x8xf32> to vector<2x8xf32>
    %84 = vector.shape_cast %83 : vector<2x8xf32> to vector<2x8x1xf32>
    %85 = tpu.reciprocal %84 {approx = true} : vector<2x8x1xf32> -> vector<2x8x1xf32>
    %86 = vector.broadcast %85 : vector<2x8x1xf32> to vector<2x8x8xf32>
    %87 = arith.mulf %82, %86 : vector<2x8x8xf32>
    %88 = arith.truncf %87 : vector<2x8x8xf32> to vector<2x8x8xbf16>
    %89 = vector.extract_strided_slice %51 {offsets = [0, 0, 32], sizes = [2, 8, 32], strides = [1, 1, 1]} : vector<2x8x128xbf16> to vector<2x8x32xbf16>
    %cst_29 = arith.constant dense<0.000000e+00> : vector<2x8x32xf32>
    %90 = tpu.matmul %88, %89, %cst_29 {dimension_numbers = #tpu.dot_dimension_numbers<[2], [1], [1], [2], [0, 0, 0, 1, 1, 2], [0], [0]>} : vector<2x8x8xbf16>, vector<2x8x32xbf16>, vector<2x8x32xf32> -> vector<2x8x32xf32>
    %91 = arith.truncf %90 : vector<2x8x32xf32> to vector<2x8x32xbf16>
    %c0_30 = arith.constant 0 : index
    %c0_31 = arith.constant 0 : index
    %c32 = arith.constant 32 : index
    %92 = vector.load %arg14[%c0_30, %c0_31, %c32] : memref<2x8x128xbf16, #tpu.memory_space<vmem>>, vector<2x8x32xbf16>
    tpu.vector_store %arg14[%c0_30, %c0_31, %c32], %91 {strides = array<i32>} : memref<2x8x128xbf16, #tpu.memory_space<vmem>>, vector<2x8x32xbf16>,
    %93 = vector.extract_strided_slice %45 {offsets = [0, 0, 64], sizes = [2, 8, 32], strides = [1, 1, 1]} : vector<2x8x128xbf16> to vector<2x8x32xbf16>
    %94 = vector.extract_strided_slice %48 {offsets = [0, 0, 64], sizes = [2, 8, 32], strides = [1, 1, 1]} : vector<2x8x128xbf16> to vector<2x8x32xbf16>
    %cst_32 = arith.constant dense<0.000000e+00> : vector<2x8x8xf32>
    %95 = tpu.matmul %93, %94, %cst_32 {dimension_numbers = #tpu.dot_dimension_numbers<[2], [2], [1], [1], [0, 0, 0, 1, 1, 1], [0], [0]>} : vector<2x8x32xbf16>, vector<2x8x32xbf16>, vector<2x8x8xf32> -> vector<2x8x8xf32>
    %96 = arith.addf %95, %54 : vector<2x8x8xf32>
    %cst_33 = arith.constant dense<0xFF800000> : vector<2x8xf32>
    %97 = vector.multi_reduction <maximumf>, %96, %cst_33 [2] : vector<2x8x8xf32> to vector<2x8xf32>
    %98 = vector.shape_cast %97 : vector<2x8xf32> to vector<2x8x1xf32>
    %99 = vector.broadcast %98 : vector<2x8x1xf32> to vector<2x8x8xf32>
    %100 = arith.subf %96, %99 : vector<2x8x8xf32>
    %101 = math.exp %100 : vector<2x8x8xf32>
    %cst_34 = arith.constant dense<0.000000e+00> : vector<2x8xf32>
    %102 = vector.multi_reduction <add>, %101, %cst_34 [2] : vector<2x8x8xf32> to vector<2x8xf32>
    %103 = vector.shape_cast %102 : vector<2x8xf32> to vector<2x8x1xf32>
    %104 = tpu.reciprocal %103 {approx = true} : vector<2x8x1xf32> -> vector<2x8x1xf32>
    %105 = vector.broadcast %104 : vector<2x8x1xf32> to vector<2x8x8xf32>
    %106 = arith.mulf %101, %105 : vector<2x8x8xf32>
    %107 = arith.truncf %106 : vector<2x8x8xf32> to vector<2x8x8xbf16>
    %108 = vector.extract_strided_slice %51 {offsets = [0, 0, 64], sizes = [2, 8, 32], strides = [1, 1, 1]} : vector<2x8x128xbf16> to vector<2x8x32xbf16>
    %cst_35 = arith.constant dense<0.000000e+00> : vector<2x8x32xf32>
    %109 = tpu.matmul %107, %108, %cst_35 {dimension_numbers = #tpu.dot_dimension_numbers<[2], [1], [1], [2], [0, 0, 0, 1, 1, 2], [0], [0]>} : vector<2x8x8xbf16>, vector<2x8x32xbf16>, vector<2x8x32xf32> -> vector<2x8x32xf32>
    %110 = arith.truncf %109 : vector<2x8x32xf32> to vector<2x8x32xbf16>
    %c0_36 = arith.constant 0 : index
    %c0_37 = arith.constant 0 : index
    %c64 = arith.constant 64 : index
    %111 = vector.load %arg14[%c0_36, %c0_37, %c64] : memref<2x8x128xbf16, #tpu.memory_space<vmem>>, vector<2x8x32xbf16>
    tpu.vector_store %arg14[%c0_36, %c0_37, %c64], %110 {strides = array<i32>} : memref<2x8x128xbf16, #tpu.memory_space<vmem>>, vector<2x8x32xbf16>,
    %112 = vector.extract_strided_slice %45 {offsets = [0, 0, 96], sizes = [2, 8, 32], strides = [1, 1, 1]} : vector<2x8x128xbf16> to vector<2x8x32xbf16>
    %113 = vector.extract_strided_slice %48 {offsets = [0, 0, 96], sizes = [2, 8, 32], strides = [1, 1, 1]} : vector<2x8x128xbf16> to vector<2x8x32xbf16>
    %cst_38 = arith.constant dense<0.000000e+00> : vector<2x8x8xf32>
    %114 = tpu.matmul %112, %113, %cst_38 {dimension_numbers = #tpu.dot_dimension_numbers<[2], [2], [1], [1], [0, 0, 0, 1, 1, 1], [0], [0]>} : vector<2x8x32xbf16>, vector<2x8x32xbf16>, vector<2x8x8xf32> -> vector<2x8x8xf32>
    %115 = arith.addf %114, %54 : vector<2x8x8xf32>
    %cst_39 = arith.constant dense<0xFF800000> : vector<2x8xf32>
    %116 = vector.multi_reduction <maximumf>, %115, %cst_39 [2] : vector<2x8x8xf32> to vector<2x8xf32>
    %117 = vector.shape_cast %116 : vector<2x8xf32> to vector<2x8x1xf32>
    %118 = vector.broadcast %117 : vector<2x8x1xf32> to vector<2x8x8xf32>
    %119 = arith.subf %115, %118 : vector<2x8x8xf32>
    %120 = math.exp %119 : vector<2x8x8xf32>
    %cst_40 = arith.constant dense<0.000000e+00> : vector<2x8xf32>
    %121 = vector.multi_reduction <add>, %120, %cst_40 [2] : vector<2x8x8xf32> to vector<2x8xf32>
    %122 = vector.shape_cast %121 : vector<2x8xf32> to vector<2x8x1xf32>
    %123 = tpu.reciprocal %122 {approx = true} : vector<2x8x1xf32> -> vector<2x8x1xf32>
    %124 = vector.broadcast %123 : vector<2x8x1xf32> to vector<2x8x8xf32>
    %125 = arith.mulf %120, %124 : vector<2x8x8xf32>
    %126 = arith.truncf %125 : vector<2x8x8xf32> to vector<2x8x8xbf16>
    %127 = vector.extract_strided_slice %51 {offsets = [0, 0, 96], sizes = [2, 8, 32], strides = [1, 1, 1]} : vector<2x8x128xbf16> to vector<2x8x32xbf16>
    %cst_41 = arith.constant dense<0.000000e+00> : vector<2x8x32xf32>
    %128 = tpu.matmul %126, %127, %cst_41 {dimension_numbers = #tpu.dot_dimension_numbers<[2], [1], [1], [2], [0, 0, 0, 1, 1, 2], [0], [0]>} : vector<2x8x8xbf16>, vector<2x8x32xbf16>, vector<2x8x32xf32> -> vector<2x8x32xf32>
    %129 = arith.truncf %128 : vector<2x8x32xf32> to vector<2x8x32xbf16>
    %c0_42 = arith.constant 0 : index
    %c0_43 = arith.constant 0 : index
    %c96 = arith.constant 96 : index
    %130 = vector.load %arg14[%c0_42, %c0_43, %c96] : memref<2x8x128xbf16, #tpu.memory_space<vmem>>, vector<2x8x32xbf16>
    tpu.vector_store %arg14[%c0_42, %c0_43, %c96], %129 {strides = array<i32>} : memref<2x8x128xbf16, #tpu.memory_space<vmem>>, vector<2x8x32xbf16>,
    %c0_44 = arith.constant 0 : index
    %c0_45 = arith.constant 0 : index
    %c0_46 = arith.constant 0 : index
    %131 = vector.load %arg14[%c0_44, %c0_45, %c0_46] : memref<2x8x128xbf16, #tpu.memory_space<vmem>>, vector<2x8x128xbf16>
    %132 = vector.shape_cast %131 : vector<2x8x128xbf16> to vector<16x128xbf16>
    %c0_47 = arith.constant 0 : index
    %c0_48 = arith.constant 0 : index
    %c0_49 = arith.constant 0 : index
    %133 = vector.load %arg6[%c0_47, %c0_48, %c0_49] : memref<1x128x128xbf16, #tpu.memory_space<vmem>>, vector<1x128x128xbf16>
    %134 = vector.shape_cast %133 : vector<1x128x128xbf16> to vector<128x128xbf16>
    %cst_50 = arith.constant dense<0.000000e+00> : vector<16x128xf32>
    %135 = tpu.matmul %132, %134, %cst_50 {dimension_numbers = #tpu.dot_dimension_numbers<[1], [0], [0], [1], [0, 0, 1, 1], [], []>} : vector<16x128xbf16>, vector<128x128xbf16>, vector<16x128xf32> -> vector<16x128xf32>
    %136 = vector.broadcast %11 : vector<1x128xf32> to vector<16x128xf32>
    %137 = arith.addf %135, %136 : vector<16x128xf32>
    %138 = arith.addf %4, %137 : vector<16x128xf32>
    %cst_51 = arith.constant dense<0.000000e+00> : vector<16xf32>
    %139 = vector.multi_reduction <add>, %138, %cst_51 [1] : vector<16x128xf32> to vector<16xf32>
    %140 = vector.shape_cast %139 : vector<16xf32> to vector<16x1xf32>
    %cst_52 = arith.constant 1.280000e+02 : f32
    %141 = vector.broadcast %cst_52 : f32 to vector<16x1xf32>
    %142 = arith.divf %140, %141 : vector<16x1xf32>
    %143 = vector.broadcast %142 : vector<16x1xf32> to vector<16x128xf32>
    %144 = arith.subf %138, %143 : vector<16x128xf32>
    %145 = arith.mulf %144, %144 : vector<16x128xf32>
    %cst_53 = arith.constant dense<0.000000e+00> : vector<16xf32>
    %146 = vector.multi_reduction <add>, %145, %cst_53 [1] : vector<16x128xf32> to vector<16xf32>
    %147 = vector.shape_cast %146 : vector<16xf32> to vector<16x1xf32>
    %cst_54 = arith.constant 1.280000e+02 : f32
    %148 = vector.broadcast %cst_54 : f32 to vector<16x1xf32>
    %149 = arith.divf %147, %148 : vector<16x1xf32>
    %150 = vector.broadcast %142 : vector<16x1xf32> to vector<16x128xf32>
    %151 = arith.subf %138, %150 : vector<16x128xf32>
    %cst_55 = arith.constant 9.99999974E-6 : f32
    %152 = vector.broadcast %cst_55 : f32 to vector<16x1xf32>
    %153 = arith.addf %149, %152 : vector<16x1xf32>
    %154 = math.rsqrt %153 : vector<16x1xf32>
    %155 = vector.broadcast %154 : vector<16x1xf32> to vector<16x128xf32>
    %156 = arith.mulf %151, %155 : vector<16x128xf32>
    %157 = vector.broadcast %9 : vector<1x128xf32> to vector<16x128xf32>
    %158 = arith.mulf %156, %157 : vector<16x128xf32>
    %159 = vector.broadcast %10 : vector<1x128xf32> to vector<16x128xf32>
    %160 = arith.addf %158, %159 : vector<16x128xf32>
    %161 = arith.truncf %160 : vector<16x128xf32> to vector<16x128xbf16>
    %c0_56 = arith.constant 0 : index
    %c0_57 = arith.constant 0 : index
    %c0_58 = arith.constant 0 : index
    %162 = vector.load %arg7[%c0_56, %c0_57, %c0_58] : memref<1x128x512xbf16, #tpu.memory_space<vmem>>, vector<1x128x512xbf16>
    %163 = vector.shape_cast %162 : vector<1x128x512xbf16> to vector<128x512xbf16>
    %cst_59 = arith.constant dense<0.000000e+00> : vector<16x512xf32>
    %164 = tpu.matmul %161, %163, %cst_59 {dimension_numbers = #tpu.dot_dimension_numbers<[1], [0], [0], [1], [0, 0, 1, 1], [], []>} : vector<16x128xbf16>, vector<128x512xbf16>, vector<16x512xf32> -> vector<16x512xf32>
    %c0_60 = arith.constant 0 : index
    %c0_61 = arith.constant 0 : index
    %c0_62 = arith.constant 0 : index
    %165 = vector.load %arg8[%c0_60, %c0_61, %c0_62] : memref<1x1x512xf32, #tpu.memory_space<vmem>>, vector<1x1x512xf32>
    %166 = vector.shape_cast %165 : vector<1x1x512xf32> to vector<1x512xf32>
    %167 = vector.broadcast %166 : vector<1x512xf32> to vector<16x512xf32>
    %168 = arith.addf %164, %167 : vector<16x512xf32>
    %cst_63 = arith.constant 1.702000e+00 : f32
    %169 = vector.broadcast %cst_63 : f32 to vector<16x512xf32>
    %170 = arith.mulf %169, %168 : vector<16x512xf32>
    %171 = arith.negf %170 : vector<16x512xf32>
    %172 = math.exp %171 : vector<16x512xf32>
    %cst_64 = arith.constant 1.000000e+00 : f32
    %173 = vector.broadcast %cst_64 : f32 to vector<16x512xf32>
    %174 = arith.addf %173, %172 : vector<16x512xf32>
    %175 = arith.divf %173, %174 : vector<16x512xf32>
    %176 = arith.mulf %168, %175 : vector<16x512xf32>
    %177 = arith.truncf %176 : vector<16x512xf32> to vector<16x512xbf16>
    %c0_65 = arith.constant 0 : index
    %c0_66 = arith.constant 0 : index
    %c0_67 = arith.constant 0 : index
    %178 = vector.load %arg9[%c0_65, %c0_66, %c0_67] : memref<1x512x128xbf16, #tpu.memory_space<vmem>>, vector<1x512x128xbf16>
    %179 = vector.shape_cast %178 : vector<1x512x128xbf16> to vector<512x128xbf16>
    %cst_68 = arith.constant dense<0.000000e+00> : vector<16x128xf32>
    %180 = tpu.matmul %177, %179, %cst_68 {dimension_numbers = #tpu.dot_dimension_numbers<[1], [0], [0], [1], [0, 0, 1, 1], [], []>} : vector<16x512xbf16>, vector<512x128xbf16>, vector<16x128xf32> -> vector<16x128xf32>
    %181 = vector.broadcast %12 : vector<1x128xf32> to vector<16x128xf32>
    %182 = arith.addf %180, %181 : vector<16x128xf32>
    %183 = arith.addf %138, %182 : vector<16x128xf32>
    %c1_i32 = arith.constant 1 : i32
    %184 = arith.cmpi ne, %arg1, %c1_i32 : i32
    %185 = arith.extui %184 : i1 to i32
    %c0_i32_69 = arith.constant 0 : i32
    %186 = arith.cmpi ne, %185, %c0_i32_69 : i32
    scf.if %186 {
      %190 = vector.shape_cast %183 : vector<16x128xf32> to vector<2x8x128xf32>
      %c0_72 = arith.constant 0 : index
      %c0_73 = arith.constant 0 : index
      %c0_74 = arith.constant 0 : index
      %191 = vector.load %arg13[%c0_72, %c0_73, %c0_74] : memref<2x8x128xf32, #tpu.memory_space<vmem>>, vector<2x8x128xf32>
      tpu.vector_store %arg13[%c0_72, %c0_73, %c0_74], %190 {strides = array<i32>} : memref<2x8x128xf32, #tpu.memory_space<vmem>>, vector<2x8x128xf32>,
    } else {
    }
    %c1_i32_70 = arith.constant 1 : i32
    %187 = arith.cmpi eq, %arg1, %c1_i32_70 : i32
    %188 = arith.extui %187 : i1 to i32
    %c0_i32_71 = arith.constant 0 : i32
    %189 = arith.cmpi ne, %188, %c0_i32_71 : i32
    scf.if %189 {
      %c0_72 = arith.constant 0 : index
      %c0_73 = arith.constant 0 : index
      %190 = vector.load %arg10[%c0_72, %c0_73] : memref<1x128xf32, #tpu.memory_space<vmem>>, vector<1x128xf32>
      %c0_74 = arith.constant 0 : index
      %c0_75 = arith.constant 0 : index
      %191 = vector.load %arg11[%c0_74, %c0_75] : memref<1x128xf32, #tpu.memory_space<vmem>>, vector<1x128xf32>
      %cst_76 = arith.constant dense<0.000000e+00> : vector<16xf32>
      %192 = vector.multi_reduction <add>, %183, %cst_76 [1] : vector<16x128xf32> to vector<16xf32>
      %193 = vector.shape_cast %192 : vector<16xf32> to vector<16x1xf32>
      %cst_77 = arith.constant 1.280000e+02 : f32
      %194 = vector.broadcast %cst_77 : f32 to vector<16x1xf32>
      %195 = arith.divf %193, %194 : vector<16x1xf32>
      %196 = vector.broadcast %195 : vector<16x1xf32> to vector<16x128xf32>
      %197 = arith.subf %183, %196 : vector<16x128xf32>
      %198 = arith.mulf %197, %197 : vector<16x128xf32>
      %cst_78 = arith.constant dense<0.000000e+00> : vector<16xf32>
      %199 = vector.multi_reduction <add>, %198, %cst_78 [1] : vector<16x128xf32> to vector<16xf32>
      %200 = vector.shape_cast %199 : vector<16xf32> to vector<16x1xf32>
      %cst_79 = arith.constant 1.280000e+02 : f32
      %201 = vector.broadcast %cst_79 : f32 to vector<16x1xf32>
      %202 = arith.divf %200, %201 : vector<16x1xf32>
      %203 = vector.broadcast %195 : vector<16x1xf32> to vector<16x128xf32>
      %204 = arith.subf %183, %203 : vector<16x128xf32>
      %cst_80 = arith.constant 9.99999974E-6 : f32
      %205 = vector.broadcast %cst_80 : f32 to vector<16x1xf32>
      %206 = arith.addf %202, %205 : vector<16x1xf32>
      %207 = math.rsqrt %206 : vector<16x1xf32>
      %208 = vector.broadcast %207 : vector<16x1xf32> to vector<16x128xf32>
      %209 = arith.mulf %204, %208 : vector<16x128xf32>
      %210 = vector.broadcast %190 : vector<1x128xf32> to vector<16x128xf32>
      %211 = arith.mulf %209, %210 : vector<16x128xf32>
      %212 = vector.broadcast %191 : vector<1x128xf32> to vector<16x128xf32>
      %213 = arith.addf %211, %212 : vector<16x128xf32>
      %214 = vector.shape_cast %213 : vector<16x128xf32> to vector<2x8x128xf32>
      %c0_81 = arith.constant 0 : index
      %c0_82 = arith.constant 0 : index
      %c0_83 = arith.constant 0 : index
      %215 = vector.load %arg13[%c0_81, %c0_82, %c0_83] : memref<2x8x128xf32, #tpu.memory_space<vmem>>, vector<2x8x128xf32>
      tpu.vector_store %arg13[%c0_81, %c0_82, %c0_83], %214 {strides = array<i32>} : memref<2x8x128xf32, #tpu.memory_space<vmem>>, vector<2x8x128xf32>,
    } else {
    }
    return
  }
  func.func @transform_0(%arg0: i32, %arg1: i32) -> (i32, i32, i32) {
    %c0_i32 = arith.constant 0 : i32
    %c0_i32_0 = arith.constant 0 : i32
    %c0_i32_1 = arith.constant 0 : i32
    return %arg0, %c0_i32, %c0_i32_0 : i32, i32, i32
  }
  func.func @transform_1(%arg0: i32, %arg1: i32) -> (i32, i32, i32) {
    %c0_i32 = arith.constant 0 : i32
    %c0_i32_0 = arith.constant 0 : i32
    %c0_i32_1 = arith.constant 0 : i32
    return %arg1, %c0_i32, %c0_i32_0 : i32, i32, i32
  }
  func.func @transform_2(%arg0: i32, %arg1: i32) -> (i32, i32, i32) {
    %c0_i32 = arith.constant 0 : i32
    %c0_i32_0 = arith.constant 0 : i32
    %c0_i32_1 = arith.constant 0 : i32
    return %arg1, %c0_i32, %c0_i32_0 : i32, i32, i32
  }
  func.func @transform_3(%arg0: i32, %arg1: i32) -> (i32, i32, i32) {
    %c0_i32 = arith.constant 0 : i32
    %c0_i32_0 = arith.constant 0 : i32
    %c0_i32_1 = arith.constant 0 : i32
    return %arg1, %c0_i32, %c0_i32_0 : i32, i32, i32
  }
  func.func @transform_4(%arg0: i32, %arg1: i32) -> (i32, i32, i32) {
    %c0_i32 = arith.constant 0 : i32
    %c0_i32_0 = arith.constant 0 : i32
    %c0_i32_1 = arith.constant 0 : i32
    return %arg1, %c0_i32, %c0_i32_0 : i32, i32, i32
  }
  func.func @transform_5(%arg0: i32, %arg1: i32) -> (i32, i32, i32) {
    %c0_i32 = arith.constant 0 : i32
    %c0_i32_0 = arith.constant 0 : i32
    %c0_i32_1 = arith.constant 0 : i32
    return %arg1, %c0_i32, %c0_i32_0 : i32, i32, i32
  }
  func.func @transform_6(%arg0: i32, %arg1: i32) -> (i32, i32, i32) {
    %c0_i32 = arith.constant 0 : i32
    %c0_i32_0 = arith.constant 0 : i32
    %c0_i32_1 = arith.constant 0 : i32
    return %arg1, %c0_i32, %c0_i32_0 : i32, i32, i32
  }
  func.func @transform_7(%arg0: i32, %arg1: i32) -> (i32, i32, i32) {
    %c0_i32 = arith.constant 0 : i32
    %c0_i32_0 = arith.constant 0 : i32
    %c0_i32_1 = arith.constant 0 : i32
    return %arg1, %c0_i32, %c0_i32_0 : i32, i32, i32
  }
  func.func @transform_8(%arg0: i32, %arg1: i32) -> (i32, i32) {
    %c0_i32 = arith.constant 0 : i32
    %c0_i32_0 = arith.constant 0 : i32
    %c0_i32_1 = arith.constant 0 : i32
    return %c0_i32, %c0_i32_0 : i32, i32
  }
  func.func @transform_9(%arg0: i32, %arg1: i32) -> (i32, i32) {
    %c0_i32 = arith.constant 0 : i32
    %c0_i32_0 = arith.constant 0 : i32
    %c0_i32_1 = arith.constant 0 : i32
    return %c0_i32, %c0_i32_0 : i32, i32
  }
  func.func @transform_10(%arg0: i32, %arg1: i32) -> (i32, i32) {
    %c0_i32 = arith.constant 0 : i32
    %c0_i32_0 = arith.constant 0 : i32
    %c0_i32_1 = arith.constant 0 : i32
    return %c0_i32, %c0_i32_0 : i32, i32
  }
  func.func @transform_11(%arg0: i32, %arg1: i32) -> (i32, i32, i32) {
    %c0_i32 = arith.constant 0 : i32
    %c0_i32_0 = arith.constant 0 : i32
    %c0_i32_1 = arith.constant 0 : i32
    return %arg0, %c0_i32, %c0_i32_0 : i32, i32, i32
  }
}

</mosaic_0001>

<bundles_post_ra>
// kernel: tpu_custom_call.1
= control target key start
LH: loop header
LB: loop body
LE: loop exit
PB: predicated region body
PF: predicated region fallthrough
CT: control target
= control target key end

     0   :  { %s5210_s0 = inlined_call_operand.hbm [shape: f32[4,8,128], index: 0, kind: input, shape index: {}]   ;;  %s5211_s1 = inlined_call_operand.hbm [shape: f32[2,8,128], index: 1, kind: input, shape index: {}]   ;;  %s5212_s2 = inlined_call_operand.hbm [shape: bf16[2,128,384], index: 2, kind: input, shape index: {}]   ;;  %s5213_s3 = inlined_call_operand.hbm [shape: f32[2,1,384], index: 3, kind: input, shape index: {}]   ;;  %s5214_s4 = inlined_call_operand.hbm [shape: bf16[2,128,128], index: 4, kind: input, shape index: {}]   ;;  %s5215_s5 = inlined_call_operand.hbm [shape: bf16[2,128,512], index: 5, kind: input, shape index: {}]   ;;  %s5216_s6 = inlined_call_operand.vmem [shape: f32[2,1,512], index: 6, kind: input, shape index: {}]   ;;  %s5217_s7 = inlined_call_operand.hbm [shape: bf16[2,512,128], index: 7, kind: input, shape index: {}]   ;;  %s5218_s8 = inlined_call_operand.vmem [shape: f32[1,128], index: 8, kind: input, shape index: {}]   ;;  %s5219_s9 = inlined_call_operand.vmem [shape: f32[1,128], index: 9, kind: input, shape index: {}]   ;;  %s5220_s10 = inlined_call_operand.vmem [shape: f32[8,8], index: 10, kind: input, shape index: {}]   ;;  %s5221_s11 = inlined_call_operand.hbm [shape: f32[4,8,128], index: 11, kind: output, shape index: {}]  }
   0x1   :  { %5246 = sst [smem:[#allocation34_spill]] %s5210_s0 }
   0x2   :  { %5247 = sst [smem:[#allocation35_spill]] %s5211_s1 }
   0x3   :  { %5248 = sst [smem:[#allocation36_spill]] %s5213_s3 }
   0x4   :  { %5249 = sst [smem:[#allocation37_spill]] %s5215_s5 }
   0x5   :  { %5250 = sst [smem:[#allocation38_spill]] %s5216_s6 }
   0x6   :  { %5251 = sst [smem:[#allocation39_spill]] %s5218_s8 }
   0x7   :  { %5252 = sst [smem:[#allocation40_spill]] %s5219_s9 }
   0x8   :  { %5253 = sst [smem:[#allocation41_spill]] %s5220_s10 }
   0x9   :  { %5254 = sst [smem:[#allocation42_spill]] %s5221_s11 }
   0xa   :  { %16 = vsyncpa [#allocation4], 0 }
   0xb   :  { %18 = vsyncpa [#allocation4 + $0x1], 0 }
   0xc   :  { %19 = vsyncpa [#allocation7], 0 }
   0xd   :  { %21 = vsyncpa [#allocation7 + $0x1], 0 }
   0xe   :  { %22 = vsyncpa [#allocation10], 0 }
   0xf   :  { %24 = vsyncpa [#allocation10 + $0x1], 0 }
  0x10   :  { %25 = vsyncpa [#allocation13], 0 }
  0x11   :  { %27 = vsyncpa [#allocation13 + $0x1], 0 }
  0x12   :  { %28 = vsyncpa [#allocation5], 0 }
  0x13   :  { %30 = vsyncpa [#allocation5 + $0x1], 0  ;;  %s4276_s17 = smov 0   ;;  %s4278_s18 = smov 0  }
  0x14   :  { %s4280_s19 = smov 0   ;;  %s4282_s20 = smov 0  }
  0x15   :  { %s4284_s21 = smov 0   ;;  %s4286_s22 = smov 0  }
  0x16   :  { %s4288_s23 = smov 0   ;;  %s4290_s24 = smov 0  }
  0x17   :  { %s4292_s25 = smov 0   ;;  %s4294_s26 = smov 0  }
  0x18   :  { %s4296_s27 = smov 0  }
  0x19 LB: > { %5255 = sst [smem:[#allocation21_spill]] %s4154_s18  ;;  %s4330_s28 = sadd.s32 4294967295, %s4190_s27   ;;  %s4190_s27 = sphi %s4296_s27, %s36_s27   ;;  %s4186_s26 = sphi %s4294_s26, %s5321_s26   ;;  %s4182_s25 = sphi %s4292_s25, %s5326_s25   ;;  %s4178_s24 = sphi %s4290_s24, %s5325_s24   ;;  %s4174_s23 = sphi %s4288_s23, %s5324_s23   ;;  %s4170_s22 = sphi %s4286_s22, %s5318_s22   ;;  %s4166_s21 = sphi %s4284_s21, %s5323_s21   ;;  %s4162_s20 = sphi %s4282_s20, %s5322_s20   ;;  %s4158_s19 = sphi %s4280_s19, %s5316_s19   ;;  %s4154_s18 = sphi %s4278_s18, %s5315_s18   ;;  %s4150_s17 = sphi %s4276_s17, %s5314_s17  }
  0x1a   : > { %5256 = sst [smem:[#allocation22_spill]] %s4158_s19  ;;  %s45_s29 = sadd.s32 1, %s4182_s25 }
  0x1b   : > { %5257 = sst [smem:[#allocation23_spill]] %s4162_s20  ;;  %p4333_p0 = scmp.ge.s32.totalorder %s45_s29, 2 }
  0x1c   : > { %5258 = sst [smem:[#allocation24_spill]] %s4170_s22  ;;  %p5227_p1 = scmp.eq.s32.totalorder %s4190_s27, 0 }
  0x1d   : > { %5259 = sst [smem:[#allocation25_spill]] %s4174_s23  ;;  %p5226_p2 = scmp.eq.s32.totalorder %s4330_s28, 0 }
  0x1e   : > { %5260 = sst [smem:[#allocation26_spill]] %s4178_s24  ;;  %s81_s12 = sadd.s32 1, %s4158_s19 }
  0x1f   : > { %5261 = sst [smem:[#allocation27_spill]] %s4186_s26  ;;  %s5328_s29 = smov (%p4333_p0, %s45_s29), 0 }
  0x20   : > { %s5262_s30 = scalar_select %p4333_p0, 1, 0 }
  0x21   : > { %5263 = sst [smem:[#allocation28_spill]] %s5328_s29  ;;  %p88_p3 = scmp.ne.s32.totalorder %s4158_s19, %s4154_s18 }
  0x22   : > { %p94_p4 = scmp.ne.s32.totalorder %s4154_s18, %s4150_s17  ;;  %s78_s13 = ssub.s32 %s4182_s25, %s5328_s29 }
  0x23   : > { %p79_p5 = scmp.eq.s32.totalorder %s78_s13, 0  ;;  %p90_p6 = por %p88_p3, %p5227_p1 }
  0x24   : > { %p4353_p7 = por %p94_p4, %p5226_p2  ;;  %p5225_p8 = scmp.lt.s32.totalorder %s4190_s27, 4 }
  0x25   : > { %s4359_s15 = scalar_select %p79_p5, %s4158_s19, %s81_s12  }
  0x26   : > { %s5264_s14 = scalar_select %p4353_p7, 1, 0 }
  0x27   : > { %5266 = sst [smem:[#allocation30_spill]] %s4359_s15  ;;  %s4362_s16 = sand.u32 1, %s4190_s27  }
  0x28   : > { %5265 = sst [smem:[#allocation29_spill]] %s5264_s14  ;;  %s4365_s11 = sand.u32 1, %s4158_s19  }
  0x29   : > { %s3081_s17 = sshll.u32 %s4365_s11, 3  ;;  %s3082_s29 = sshll.u32 %s4182_s25, 7 }
  0x2a   : > { %s5267_s1 = sld [smem:[#allocation35_spill]]  ;;  %s397_s8 = scalar_lea.vmem [#allocation6], %s3081_s17 }
  0x2b   : > { %s404_s12 = sshll.u32 %s397_s8, 4  ;;  %p4378_p9 = pnand %p5225_p8, %p90_p6  ;;  %s4374_s12 = int_to_ptr.vmem [resolvable:$true] %s404_s12 }
  0x2d   : > { %s5268_s15 = scalar_select %p4378_p9, 1, 0 }
  0x2e   : > { %p4389_p13 = pneg %p4378_p9 }
  0x30   : > { %s4372_s9 = scalar_lea.hbm %s5267_s1, %s3082_s29  ;;  %s3851_s13 = scalar_lea.hbm %s5267_s1, 256 }
  0x31   : > { %s3846_s24 = scalar_lea.hbm %s4372_s9, 128  ;;  %p3852_p5 = scmp.lt.u32.totalorder %s4372_s9, %s5267_s1 }
  0x32   : > { %p3847_p12 = scmp.ne.s32.totalorder %s4372_s9, %s3846_s24  ;;  %p3853_p6 = scmp.lt.u32.totalorder %s3851_s13, %s3846_s24 }
  0x33   : > { %p3855_p2 = scmp.lt.u32.totalorder %s3846_s24, %s4372_s9 }
  0x34   : > { %p3849_p3 = pnand %p4389_p13, %p3847_p12  ;;  %p3854_p8 = por %p3853_p6, %p3852_p5 }
  0x36   : > { %p3850_p4 = pneg %p3849_p3  ;;  %p3856_p1 = por %p3855_p2, %p3854_p8 }
  0x38   : > { %p3857_p10 = pnand %p3856_p1, %p3850_p4 }
  0x3a   : > { %3860 = shalt.err (!%p3857_p10)
}
  0x3b   : > { %s3861_s19 = scalar_lea.vmem %s4374_s12, 128  ;;  %s4192_s8 = smov [#allocation6]  }
  0x3c   : > { %p3862_p12 = scmp.ne.s32.totalorder %s4374_s12, %s3861_s19  ;;  %s3866_s17 = sshll.u32 %s4192_s8, 4  ;;  %s3867_s17 = int_to_ptr.vmem [resolvable:$false] %s3866_s17 }
  0x3d   : > { %s3868_s6 = scalar_lea.vmem %s3867_s17, 256  ;;  %p3869_p7 = scmp.lt.s32.totalorder %s4374_s12, %s3867_s17 }
  0x3e   : > { %p3864_p3 = pnand %p3862_p12, %p4389_p13  ;;  %p3870_p0 = scmp.lt.s32.totalorder %s3868_s6, %s3861_s19 }
  0x40   : > { %p3865_p11 = pneg %p3864_p3  ;;  %p3871_p5 = por %p3870_p0, %p3869_p7 }
  0x42   : > { %p3872_p6 = pnand %p3871_p5, %p3865_p11 }
  0x44   : > { %3875 = shalt.err (!%p3872_p6)
}
  0x45   : > { %s5270_s10 = scalar_lea.sflag [#allocation7], %s4362_s16  ;;  %p5271_p1 = scmp.lt.s32.totalorder %s4190_s27, 5 }
  0x46   : > { %3520 = dma.hbm_to_vmem [thread:$0]  (!%p4378_p9), %s4372_s9, 128, %s4374_s12, %s5270_s10  }
  0x47   : > { %p5272_p0 = scmp.ge.s32.totalorder %s4190_s27, 1  ;;  %s3494_s24 = smul.u32 3, %s4365_s11 }
  0x48   : > { %s3495_s8 = smul.u32 48, %s4182_s25  ;;  %s5235_s17 = sshll.u32 %s4182_s25, 12 }
  0x49   : > { %p4418_p2 = pnand %p5272_p0, %p5271_p1  ;;  %s5275_s3 = sld [smem:[#allocation36_spill]] }
  0x4a   : > { %s436_s9 = scalar_lea.vmem [#allocation9], %s3494_s24  ;;  %s5276_s5 = sld [smem:[#allocation37_spill]] }
  0x4b   : > { %s5273_s19 = scalar_select %p4418_p2, 1, 0 }
  0x4c   : > { %s444_s12 = sshll.u32 %s436_s9, 4  ;;  %s5236_s18 = scalar_lea.sflag [#allocation10], %s4362_s16  ;;  %s4431_s12 = int_to_ptr.vmem [resolvable:$true] %s444_s12 }
  0x4d   : > { %5274 = sst [smem:[#allocation31_spill]] %s5273_s19 }
  0x4f   : > { %s4429_s23 = scalar_lea.hbm %s5275_s3, %s3495_s8  ;;  %s3881_s6 = scalar_lea.hbm %s5275_s3, 96 }
  0x50   : > { %s4438_s13 = scalar_lea.hbm %s5276_s5, %s5235_s17  ;;  %s3876_s19 = scalar_lea.hbm %s4429_s23, 48 }
  0x51   : > { %p3877_p7 = scmp.ne.s32.totalorder %s4429_s23, %s3876_s19  ;;  %p3882_p11 = scmp.lt.u32.totalorder %s4429_s23, %s5275_s3 }
  0x52   : > { %p3883_p4 = scmp.lt.u32.totalorder %s3881_s6, %s3876_s19  ;;  %p3885_p3 = scmp.lt.u32.totalorder %s3876_s19, %s4429_s23 }
  0x53   : > { %p3879_p8 = pnand %p3877_p7, %p4389_p13 }
  0x54   : > { %p3884_p12 = por %p3883_p4, %p3882_p11 }
  0x55   : > { %p3880_p10 = pneg %p3879_p8 }
  0x56   : > { %p3886_p5 = por %p3885_p3, %p3884_p12 }
  0x58   : > { %p3887_p6 = pnand %p3886_p5, %p3880_p10 }
  0x5a   : > { %3890 = shalt.err (!%p3887_p6)
}
  0x5b   : > { %s3891_s14 = scalar_lea.vmem %s4431_s12, 48  ;;  %s4193_s10 = smov [#allocation9]  }
  0x5c   : > { %p3892_p1 = scmp.ne.s32.totalorder %s4431_s12, %s3891_s14  ;;  %s3896_s1 = sshll.u32 %s4193_s10, 4  ;;  %s3897_s1 = int_to_ptr.vmem [resolvable:$false] %s3896_s1 }
  0x5d   : > { %s3898_s8 = scalar_lea.vmem %s3897_s1, 96  ;;  %p3899_p8 = scmp.lt.s32.totalorder %s4431_s12, %s3897_s1 }
  0x5e   : > { %p3894_p0 = pnand %p3892_p1, %p4389_p13  ;;  %p3900_p2 = scmp.lt.s32.totalorder %s3898_s8, %s3891_s14 }
  0x60   : > { %p3895_p7 = pneg %p3894_p0  ;;  %p3901_p11 = por %p3900_p2, %p3899_p8 }
  0x62   : > { %p3902_p4 = pnand %p3901_p11, %p3895_p7 }
  0x64   : > { %3905 = shalt.err (!%p3902_p4)
}
  0x65   : > { %3526 = dma.hbm_to_vmem [thread:$0]  (!%p4378_p9), %s4429_s23, 48, %s4431_s12, %s5236_s18  }
  0x66   : > { %s5277_s19 = sshll.u32 %s4365_s11, 8  ;;  %s5237_s9 = scalar_lea.sflag [#allocation13], %s4362_s16 }
  0x67   : > { %s476_s6 = scalar_lea.vmem [#allocation12], %s5277_s19  ;;  %s3906_s14 = scalar_lea.hbm %s4438_s13, 4096 }
  0x68   : > { %s483_s24 = sshll.u32 %s476_s6, 4  ;;  %p3907_p2 = scmp.ne.s32.totalorder %s4438_s13, %s3906_s14  ;;  %s4466_s24 = int_to_ptr.vmem [resolvable:$true] %s483_s24 }
  0x69   : > { %s3911_s8 = scalar_lea.hbm %s5276_s5, 8192  ;;  %p3912_p3 = scmp.lt.u32.totalorder %s4438_s13, %s5276_s5 }
  0x6a   : > { %p3909_p10 = pnand %p3907_p2, %p4389_p13  ;;  %p3913_p5 = scmp.lt.u32.totalorder %s3911_s8, %s3906_s14 }
  0x6b   : > { %p3915_p1 = scmp.lt.u32.totalorder %s3906_s14, %s4438_s13 }
  0x6c   : > { %p3910_p12 = pneg %p3909_p10  ;;  %p3914_p6 = por %p3913_p5, %p3912_p3 }
  0x6e   : > { %p3916_p0 = por %p3915_p1, %p3914_p6 }
  0x70   : > { %p3917_p7 = pnand %p3916_p0, %p3910_p12 }
  0x72   : > { %3920 = shalt.err (!%p3917_p7)
}
  0x73   : > { %s3921_s23 = scalar_lea.vmem %s4466_s24, 4096  ;;  %s4194_s12 = smov [#allocation12]  }
  0x74   : > { %p3922_p8 = scmp.ne.s32.totalorder %s4466_s24, %s3921_s23  ;;  %s3926_s19 = sshll.u32 %s4194_s12, 4  ;;  %s3927_s19 = int_to_ptr.vmem [resolvable:$false] %s3926_s19 }
  0x75   : > { %s3928_s3 = scalar_lea.vmem %s3927_s19, 8192  ;;  %p3929_p2 = scmp.lt.s32.totalorder %s4466_s24, %s3927_s19 }
  0x76   : > { %p3924_p11 = pnand %p3922_p8, %p4389_p13  ;;  %p3930_p10 = scmp.lt.s32.totalorder %s3928_s3, %s3921_s23 }
  0x78   : > { %p3925_p4 = pneg %p3924_p11  ;;  %p3931_p3 = por %p3930_p10, %p3929_p2 }
  0x7a   : > { %p3932_p5 = pnand %p3931_p3, %p3925_p4 }
  0x7c   : > { %3935 = shalt.err (!%p3932_p5)
}
  0x7d   : > { %s4195_s17 = smov 256   ;;  %s4196_s6 = smov 16  }
  0x7e   : > { %3532 = dma.hbm_to_vmem [thread:$0]  (!%p4378_p9), %s4438_s13, 4096, %s4466_s24, %s5237_s9, %s4195_s17, %s4195_s17, %s4196_s6  }
  0x7f   : > { %s5278_s14 = sshll.u32 %s4182_s25, 12  ;;  %s5279_s23 = sshll.u32 %s4365_s11, 8 }
  0x80   : > { %s4497_s8 = scalar_lea.hbm %s5217_s7, %s5278_s14  ;;  %s504_s12 = scalar_lea.vmem [#allocation14], %s5279_s23 }
  0x81   : > { %s511_s19 = sshll.u32 %s504_s12, 4  ;;  %s3075_s3 = sadd.s32 4294967294, %s4190_s27   ;;  %s4501_s19 = int_to_ptr.vmem [resolvable:$true] %s511_s19 }
  0x82   : > { %s48_s18 = sadd.s32 1, %s4186_s26  ;;  %p5280_p12 = scmp.ne.s32.totalorder %s5262_s30, 0 }
  0x83   : > { %s55_s5 = sadd.s32 1, %s4170_s22  ;;  %p62_p6 = scmp.ne.s32.totalorder %s4170_s22, %s4166_s21 }
  0x84   : > { %s5330_s18 = smov (!%p5280_p12, %s48_s18), %s4186_s26  ;;  %p68_p0 = scmp.ne.s32.totalorder %s4166_s21, %s4162_s20 }
  0x85   : > { %p50_p1 = scmp.ge.s32.totalorder %s5330_s18, 2  ;;  %p5281_p7 = scmp.eq.s32.totalorder %s4190_s27, 0 }
  0x86   : > { %p337_p11 = scmp.eq.s32.totalorder %s4330_s28, 3  ;;  %p5284_p4 = scmp.eq.s32.totalorder %s4330_s28, 0 }
  0x87   : > { %p4515_p8 = por %p5281_p7, %p62_p6  ;;  %s5332_s18 = smov (%p50_p1, %s5330_s18), 0 }
  0x88   : > { %5283 = sst [smem:[#allocation32_spill]] %s5332_s18  ;;  %p4524_p2 = por %p5284_p4, %p68_p0 }
  0x89   : > { %p4528_p10 = por %p337_p11, %p62_p6  ;;  %s52_s17 = ssub.s32 %s4186_s26, %s5332_s18 }
  0x8a   : > { %s5285_s30 = scalar_select %p4524_p2, 1, 0 }
  0x8b   : > { %s5286_s24 = scalar_select %p4528_p10, 1, 0 }
  0x8c   : > { %p343_p3 = scmp.eq.s32.totalorder %s3075_s3, 3  ;;  %p53_p5 = scmp.eq.s32.totalorder %s52_s17, 0 }
  0x8d   : > { %s372_s6 = sand.u32 1, %s4170_s22   ;;  %s3245_s23 = sshll.u32 %s4186_s26, 8 }
  0x8e   : > { %p4535_p12 = por %p343_p3, %p68_p0  ;;  %s3078_s1 = sshll.u32 %s372_s6, 4 }
  0x8f   : > { %s4540_s10 = scalar_select %p53_p5, %s4170_s22, %s55_s5  }
  0x90   : > { %s5287_s14 = scalar_select %p4535_p12, 1, 0 }
  0x91   : > { %5288 = sst [smem:[#allocation33_spill]] %s4540_s10  ;;  %s376_s3 = scalar_lea.vmem [#allocation3], %s3078_s1 }
  0x92   : > { %s5289_s0 = sld [smem:[#allocation34_spill]]  ;;  %s383_s17 = sshll.u32 %s376_s3, 4  ;;  %s4556_s17 = int_to_ptr.vmem [resolvable:$true] %s383_s17 }
  0x93   : > { %p5290_p6 = scmp.lt.s32.totalorder %s4190_s27, 4  ;;  %s4558_s5 = scalar_lea.sflag [#allocation4], %s372_s6 }
  0x95   : > { %p4552_p1 = pnand %p5290_p6, %p4515_p8 }
  0x97   : > { %p3938_p7 = pneg %p4552_p1 }
  0x98   : > { %s4546_s20 = scalar_lea.hbm %s5289_s0, %s3245_s23  ;;  %s3941_s23 = scalar_lea.hbm %s5289_s0, 512 }
  0x99   : > { %s3936_s9 = scalar_lea.hbm %s4546_s20, 256  ;;  %p3942_p8 = scmp.lt.u32.totalorder %s4546_s20, %s5289_s0 }
  0x9a   : > { %p3937_p0 = scmp.ne.s32.totalorder %s4546_s20, %s3936_s9  ;;  %p3943_p3 = scmp.lt.u32.totalorder %s3941_s23, %s3936_s9 }
  0x9b   : > { %p3945_p6 = scmp.lt.u32.totalorder %s3936_s9, %s4546_s20 }
  0x9c   : > { %p3939_p11 = pnand %p3938_p7, %p3937_p0  ;;  %p3944_p5 = por %p3943_p3, %p3942_p8 }
  0x9e   : > { %p3940_p4 = pneg %p3939_p11  ;;  %p3946_p12 = por %p3945_p6, %p3944_p5 }
  0xa0   : > { %p3947_p10 = pnand %p3946_p12, %p3940_p4 }
  0xa2   : > { %3950 = shalt.err (!%p3947_p10)
}
  0xa3   : > { %s3951_s6 = scalar_lea.vmem %s4556_s17, 256  ;;  %s4197_s13 = smov [#allocation3]  }
  0xa4   : > { %p3952_p0 = scmp.ne.s32.totalorder %s4556_s17, %s3951_s6  ;;  %s3956_s1 = sshll.u32 %s4197_s13, 4  ;;  %s3957_s1 = int_to_ptr.vmem [resolvable:$false] %s3956_s1 }
  0xa5   : > { %s3958_s12 = scalar_lea.vmem %s3957_s1, 512  ;;  %p3959_p9 = scmp.lt.s32.totalorder %s4556_s17, %s3957_s1 }
  0xa6   : > { %p3954_p11 = pnand %p3952_p0, %p3938_p7  ;;  %p3960_p8 = scmp.lt.s32.totalorder %s3958_s12, %s3951_s6 }
  0xa8   : > { %p3955_p2 = pneg %p3954_p11  ;;  %p3961_p3 = por %p3960_p8, %p3959_p9 }
  0xaa   : > { %p3962_p5 = pnand %p3961_p3, %p3955_p2 }
  0xac   : > { %3965 = shalt.err (!%p3962_p5)
}
  0xad   : > { %s4198_s9 = smov 128   ;;  %s4199_s23 = smov 8  }
  0xae   : > { %3517 = dma.hbm_to_vmem [thread:$0]  (!%p4552_p1), %s4546_s20, 256, %s4556_s17, %s4558_s5, %s4198_s9, %s4198_s9, %s4199_s23  }
  0xaf   : > { %s3492_s3 = smul.u32 192, %s4365_s11  ;;  %s3085_s0 = sshll.u32 %s4365_s11, 6 }
  0xb0   : > { %s3493_s13 = smul.u32 3072, %s4182_s25  ;;  %s3971_s17 = scalar_lea.hbm %s5212_s2, 6144 }
  0xb1   : > { %s415_s26 = scalar_lea.vmem [#allocation8], %s3492_s3 }
  0xb2   : > { %s4592_s12 = scalar_lea.hbm %s5212_s2, %s3493_s13  ;;  %s422_s10 = sshll.u32 %s415_s26, 4  ;;  %s4594_s10 = int_to_ptr.vmem [resolvable:$true] %s422_s10 }
  0xb3   : > { %s3966_s22 = scalar_lea.hbm %s4592_s12, 3072  ;;  %p3972_p12 = scmp.lt.u32.totalorder %s4592_s12, %s5212_s2 }
  0xb4   : > { %p3967_p9 = scmp.ne.s32.totalorder %s4592_s12, %s3966_s22  ;;  %p3973_p1 = scmp.lt.u32.totalorder %s3971_s17, %s3966_s22 }
  0xb5   : > { %p3975_p4 = scmp.lt.u32.totalorder %s3966_s22, %s4592_s12 }
  0xb6   : > { %p3969_p2 = pnand %p3967_p9, %p4389_p13  ;;  %p3974_p7 = por %p3973_p1, %p3972_p12 }
  0xb8   : > { %p3970_p10 = pneg %p3969_p2  ;;  %p3976_p6 = por %p3975_p4, %p3974_p7 }
  0xba   : > { %p3977_p0 = pnand %p3976_p6, %p3970_p10 }
  0xbc   : > { %3980 = shalt.err (!%p3977_p0)
}
  0xbd   : > { %s3981_s26 = scalar_lea.vmem %s4594_s10, 3072  ;;  %s4200_s23 = smov [#allocation8]  }
  0xbe   : > { %p3982_p11 = scmp.ne.s32.totalorder %s4594_s10, %s3981_s26  ;;  %s3986_s3 = sshll.u32 %s4200_s23, 4  ;;  %s3987_s3 = int_to_ptr.vmem [resolvable:$false] %s3986_s3 }
  0xbf   : > { %s3988_s13 = scalar_lea.vmem %s3987_s3, 6144  ;;  %p3989_p5 = scmp.lt.s32.totalorder %s4594_s10, %s3987_s3 }
  0xc0   : > { %p3984_p8 = pnand %p3982_p11, %p4389_p13  ;;  %p3990_p9 = scmp.lt.s32.totalorder %s3988_s13, %s3981_s26 }
  0xc2   : > { %p3985_p3 = pneg %p3984_p8  ;;  %p3991_p2 = por %p3990_p9, %p3989_p5 }
  0xc4   : > { %p3992_p12 = pnand %p3991_p2, %p3985_p3 }
  0xc6   : > { %3995 = shalt.err (!%p3992_p12)
}
  0xc7   : > { %s4201_s22 = smov 192   ;;  %s4202_s1 = smov 12  }
  0xc8   : > { %p5292_p10 = scmp.ne.s32.totalorder %s5268_s15, 0  ;;  %s5293_s6 = scalar_lea.sflag [#allocation7], %s4362_s16 }
  0xc9   : > { %s3246_s18 = sshll.u32 %s4182_s25, 10  ;;  %s455_s20 = scalar_lea.vmem [#allocation11], %s3085_s0 }
  0xca   : > { %3523 = dma.hbm_to_vmem [thread:$0]  (!%p5292_p10), %s4592_s12, 3072, %s4594_s10, %s5293_s6, %s4201_s22, %s4201_s22, %s4202_s1  }
  0xcb   : > { %s462_s17 = sshll.u32 %s455_s20, 4  ;;  %s4625_s26 = scalar_lea.hbm %s5214_s4, %s3246_s18  ;;  %s4627_s17 = int_to_ptr.vmem [resolvable:$true] %s462_s17 }
  0xcc   : > { %s3996_s23 = scalar_lea.hbm %s4625_s26, 1024  ;;  %s4001_s0 = scalar_lea.hbm %s5214_s4, 2048 }
  0xcd   : > { %p3997_p1 = scmp.ne.s32.totalorder %s4625_s26, %s3996_s23  ;;  %p4002_p6 = scmp.lt.u32.totalorder %s4625_s26, %s5214_s4 }
  0xce   : > { %p4003_p0 = scmp.lt.u32.totalorder %s4001_s0, %s3996_s23  ;;  %p4005_p8 = scmp.lt.u32.totalorder %s3996_s23, %s4625_s26 }
  0xcf   : > { %p3999_p7 = pnand %p3997_p1, %p4389_p13 }
  0xd0   : > { %p4004_p11 = por %p4003_p0, %p4002_p6 }
  0xd1   : > { %p4000_p4 = pneg %p3999_p7 }
  0xd2   : > { %p4006_p3 = por %p4005_p8, %p4004_p11 }
  0xd4   : > { %p4007_p5 = pnand %p4006_p3, %p4000_p4 }
  0xd6   : > { %4010 = shalt.err (!%p4007_p5)
}
  0xd7   : > { %s4011_s13 = scalar_lea.vmem %s4627_s17, 1024  ;;  %s4203_s22 = smov [#allocation11]  }
  0xd8   : > { %p4012_p9 = scmp.ne.s32.totalorder %s4627_s17, %s4011_s13  ;;  %s4016_s1 = sshll.u32 %s4203_s22, 4  ;;  %s4017_s1 = int_to_ptr.vmem [resolvable:$false] %s4016_s1 }
  0xd9   : > { %s4018_s6 = scalar_lea.vmem %s4017_s1, 2048  ;;  %p4019_p1 = scmp.lt.s32.totalorder %s4627_s17, %s4017_s1 }
  0xda   : > { %p4014_p2 = pnand %p4012_p9, %p4389_p13  ;;  %p4020_p7 = scmp.lt.s32.totalorder %s4018_s6, %s4011_s13 }
  0xdc   : > { %p4015_p12 = pneg %p4014_p2  ;;  %p4021_p6 = por %p4020_p7, %p4019_p1 }
  0xde   : > { %p4022_p0 = pnand %p4021_p6, %p4015_p12 }
  0xe0   : > { %4025 = shalt.err (!%p4022_p0)
}
  0xe1   : > { %s4204_s18 = smov 64   ;;  %s4205_s20 = smov 4  }
  0xe2   : > { %s5294_s5 = scalar_lea.sflag [#allocation10], %s4362_s16  ;;  %s4026_s9 = scalar_lea.hbm %s4497_s8, 4096 }
  0xe3   : > { %3529 = dma.hbm_to_vmem [thread:$0]  (!%p5292_p10), %s4625_s26, 1024, %s4627_s17, %s5294_s5, %s4204_s18, %s4204_s18, %s4205_s20  }
  0xe4   : > { %p4027_p4 = scmp.ne.s32.totalorder %s4497_s8, %s4026_s9  ;;  %s4031_s11 = scalar_lea.hbm %s5217_s7, 8192 }
  0xe5   : > { %p4032_p3 = scmp.lt.u32.totalorder %s4497_s8, %s5217_s7  ;;  %p4033_p5 = scmp.lt.u32.totalorder %s4031_s11, %s4026_s9 }
  0xe6   : > { %p4029_p11 = pnand %p4027_p4, %p4389_p13  ;;  %p4035_p2 = scmp.lt.u32.totalorder %s4026_s9, %s4497_s8 }
  0xe7   : > { %p4034_p9 = por %p4033_p5, %p4032_p3 }
  0xe8   : > { %p4030_p8 = pneg %p4029_p11 }
  0xe9   : > { %p4036_p12 = por %p4035_p2, %p4034_p9 }
  0xeb   : > { %p4037_p1 = pnand %p4036_p12, %p4030_p8 }
  0xed   : > { %4040 = shalt.err (!%p4037_p1)
}
  0xee   : > { %s4041_s17 = scalar_lea.vmem %s4501_s19, 4096  ;;  %s4206_s26 = smov [#allocation14]  }
  0xef   : > { %p4042_p7 = scmp.ne.s32.totalorder %s4501_s19, %s4041_s17  ;;  %s4046_s3 = sshll.u32 %s4206_s26, 4  ;;  %s4047_s3 = int_to_ptr.vmem [resolvable:$false] %s4046_s3 }
  0xf0   : > { %s4048_s13 = scalar_lea.vmem %s4047_s3, 8192  ;;  %p4049_p4 = scmp.lt.s32.totalorder %s4501_s19, %s4047_s3 }
  0xf1   : > { %p4044_p6 = pnand %p4042_p7, %p4389_p13  ;;  %p4050_p11 = scmp.lt.s32.totalorder %s4048_s13, %s4041_s17 }
  0xf3   : > { %p4045_p0 = pneg %p4044_p6  ;;  %p4051_p3 = por %p4050_p11, %p4049_p4 }
  0xf5   : > { %p4052_p5 = pnand %p4051_p3, %p4045_p0 }
  0xf7   : > { %4055 = shalt.err (!%p4052_p5)
}
  0xf8   : > { %s5295_s22 = scalar_lea.sflag [#allocation13], %s4362_s16  ;;  %s5296_s29 = sld [smem:[#allocation31_spill]] }
  0xf9   : > { %3535 = dma.hbm_to_vmem [thread:$0]  (!%p5292_p10), %s4497_s8, 4096, %s4501_s19, %s5295_s22, %s4204_s18, %s4204_s18, %s4205_s20  }
  0xfe   : > { %p5297_p13 = scmp.ne.s32.totalorder %s5296_s29, 0 }
  0xff   : > { %s4684_s1 = sand.u32 (!%p5297_p13), 1, %s4166_s21   ;;  %p5298_p8 = scmp.ne.s32.totalorder (!%p5297_p13), %s5285_s30, 0 }
 0x100   : > { %523 = sbr.rel (%p5297_p13) target bundleno = 4697 (0x1259), region = 64  ;;  %s3095_s6 = sshll.u32 (!%p5297_p13), %s4684_s1, 4 }
 0x101   : > { %s526_s15 = scalar_lea.sflag (!%p5297_p13), [#allocation4], %s4684_s1  ;;  %s4690_s5 = scalar_lea.vmem (!%p5297_p13), [#allocation3], %s3095_s6 }
 0x107   : > { %4129 = dma.done.wait (%p5298_p8), %s526_s15, 256  }
 0x108   : > { %4131 = vsyncadd (%p5298_p8), %s526_s15, 4294967040  ;;  %s5299_s16 = sld [smem:[#allocation21_spill]]  ;;  %s5300_s8 = sld [smem:[#allocation29_spill]] }
 0x109   : > { %s534_s19 = sand.u32 1, %s4330_s28  }
 0x10a   : > { %s535_s9 = scalar_lea.sflag [#allocation7], %s534_s19 }
 0x10e   : > { %s536_s18 = sand.u32 1, %s5299_s16   ;;  %p5301_p10 = scmp.ne.s32.totalorder %s5300_s8, 0 }
 0x10f   : > { %s3096_s20 = sshll.u32 %s536_s18, 3 }
 0x110   : > { %s4698_s23 = scalar_lea.vmem [#allocation6], %s3096_s20 }
 0x111   : > { %4133 = dma.done.wait (%p5301_p10), %s535_s9, 3200  }
 0x112   : > { %4135 = vsyncadd (%p5301_p10), %s535_s9, 4294964096  ;;  %s3496_s10 = smul.u32 192, %s536_s18  ;;  %s553_s30 = scalar_lea.sflag [#allocation10], %s534_s19 }
 0x113   : > { %s3497_s11 = smul.u32 3, %s536_s18 }
 0x114   : > { %s4704_s0 = scalar_lea.vmem [#allocation8], %s3496_s10 }
 0x115   : > { %s4706_s12 = scalar_lea.vmem [#allocation9], %s3497_s11 }
 0x116   : > { %4137 = dma.done.wait (%p5301_p10), %s553_s30, 1072  }
 0x117   : > { %4139 = vsyncadd (%p5301_p10), %s553_s30, 4294966224  ;;  %s3097_s28 = sshll.u32 %s536_s18, 6  ;;  %s3098_s17 = sshll.u32 %s536_s18, 8 }
 0x118   : > { %s4712_s26 = scalar_lea.vmem [#allocation11], %s3097_s28  ;;  %s571_s3 = scalar_lea.sflag [#allocation13], %s534_s19 }
 0x119   : > { %s4714_s13 = scalar_lea.vmem [#allocation12], %s3098_s17 }
 0x11a   : > { %4141 = dma.done.wait (%p5301_p10), %s571_s3, 8192  }
 0x11b   : > { %4143 = vsyncadd (%p5301_p10), %s571_s3, 4294959104  ;;  %s5302_s22 = sld [smem:[#allocation25_spill]]  ;;  %s5303_s9 = sld [smem:[#allocation38_spill]] }
 0x11c   : > { %s4727_s10 = scalar_lea.vmem [#allocation14], %s3098_s17  ;;  %s4731_s19 = scalar_lea.vmem [#allocation15], %s3095_s6 }
 0x121   : > { %p657_p9 = scmp.lt.s32.totalorder %s5302_s22, 1  ;;  %p3102_p2 = scmp.ne.s32.totalorder %s5302_s22, 0 }
 0x122   : > { %v667_v0 = vld [vmem:[%s4690_s5] sm:$0xff] (!%p3102_p2)  ;;  %v668_v1 = vld [vmem:[%s4690_s5 + $0x8] sm:$0xff] (!%p3102_p2) }
 0x123   : > { %s658_s29 = scalar_select %p657_p9, %s5302_s22, 1 }
 0x124   : > { %666 = sbr.rel (%p3102_p2) target bundleno = 299 (0x12b), region = 96  ;;  %669 = vst [vmem:[%s4731_s19] sm:$0xff] (!%p3102_p2), %v667_v0  ;;  %670 = vst [vmem:[%s4731_s19 + $0x8] sm:$0xff] (!%p3102_p2), %v668_v1 }
 0x125   : > { %s3101_s15 = sshll.u32 %s658_s29, 2 }
 0x126   : > { %s4725_s18 = scalar_lea.vmem %s5303_s9, %s3101_s15 }
 0x12b PF: > { %v671_v2 = vld [vmem:[%s4731_s19] sm:$0xff]  ;;  %v672_v3 = vld [vmem:[%s4731_s19 + $0x8] sm:$0xff]  ;;  %v4207_v6 = vmov 0.0   ;;  %v4208_v32 = vmov 0   ;;  %vm4209_vm0 = vmmov 0   ;;  %v697_v42 = vlaneseq  ;;  %s5304_s8 = sld [smem:[#allocation41_spill]] }
 0x12c   : > { %674 = vadd.xlane.f32.xlu0 %v671_v2  ;;  %v3646_v4 = vld [vmem:[%s4704_s0 + $0x4] ss:$12 sps:$4 sm:$0xff]   ;;  %v3648_v5 = vld [vmem:[%s4704_s0] ss:$12 sps:$4 sm:$0xff]   ;;  %3356 = vmatprep.subr.bf16.mxu1 %v4207_v6  ;;  %v3649_v7 = vld [vmem:[%s4704_s0 + $0x8] ss:$12 sps:$4 sm:$0xff]  }
 0x12d   : > { %v3650_v8 = vld [vmem:[%s4704_s0 + $0x1c] ss:$12 sps:$4 sm:$0xff]   ;;  %887 = vmatprep.subr.bf16.mxu0 %v3646_v4  ;;  %3357 = vmatpush3.bf16.msra.mxu1 %v3649_v7  ;;  %v3652_v17 = vld [vmem:[%s4704_s0 + $0x18] ss:$12 sps:$4 sm:$0xff]   ;;  %v3653_v18 = vld [vmem:[%s4704_s0 + $0x20] ss:$12 sps:$4 sm:$0xff]  }
 0x12e   : > { %888 = vmatpush1.bf16.msra.mxu0 %v3648_v5  ;;  %3358 = vmatprep.subr.bf16.mxu1 %v4207_v6  ;;  %v3654_v19 = vld [vmem:[%s4704_s0 + $0x34] ss:$12 sps:$4 sm:$0xff]   ;;  %v3656_v20 = vld [vmem:[%s4704_s0 + $0x30] ss:$12 sps:$4 sm:$0xff]   ;;  %v3657_v21 = vld [vmem:[%s4704_s0 + $0x38] ss:$12 sps:$4 sm:$0xff]  }
 0x12f   : > { %889 = vmatprep.subr.bf16.mxu0 %v3650_v8  ;;  %v3658_v22 = vld [vmem:[%s4704_s0 + $0x4c] ss:$12 sps:$4 sm:$0xff]   ;;  %v3660_v23 = vld [vmem:[%s4704_s0 + $0x48] ss:$12 sps:$4 sm:$0xff]   ;;  %v3661_v24 = vld [vmem:[%s4704_s0 + $0x50] ss:$12 sps:$4 sm:$0xff]   ;;  %919 = vmatprep.mubr.bf16.mxu0 %v4208_v32 }
 0x130   : > { %676 = vadd.xlane.f32.xlu0 %v672_v3  ;;  %v3662_v25 = vld [vmem:[%s4704_s0 + $0x64] ss:$12 sps:$4 sm:$0xff]   ;;  %v3664_v26 = vld [vmem:[%s4704_s0 + $0x60] ss:$12 sps:$4 sm:$0xff]   ;;  %v3665_v27 = vld [vmem:[%s4704_s0 + $0x68] ss:$12 sps:$4 sm:$0xff]   ;;  %3372 = vmatprep.mubr.msk.bf16.mxu1 %vm4209_vm0, %v4207_v6 }
 0x131   : > { %3359 = vmatpush3.bf16.msra.mxu1 %v3653_v18  ;;  %v3666_v28 = vld [vmem:[%s4704_s0 + $0x7c] ss:$12 sps:$4 sm:$0xff]   ;;  %v3668_v29 = vld [vmem:[%s4704_s0 + $0x78] ss:$12 sps:$4 sm:$0xff]   ;;  %v3669_v30 = vld [vmem:[%s4704_s0 + $0x80] ss:$12 sps:$4 sm:$0xff]  }
 0x132   : > { %890 = vmatpush1.bf16.msra.mxu0 %v3652_v17  ;;  %3360 = vmatprep.subr.bf16.mxu1 %v4207_v6  ;;  %v3670_v31 = vld [vmem:[%s4704_s0 + $0x94] ss:$12 sps:$4 sm:$0xff]   ;;  %v3672_v33 = vld [vmem:[%s4704_s0 + $0x90] ss:$12 sps:$4 sm:$0xff]   ;;  %v3673_v34 = vld [vmem:[%s4704_s0 + $0x98] ss:$12 sps:$4 sm:$0xff]  }
 0x133   : > { %891 = vmatprep.subr.bf16.mxu0 %v3654_v19  ;;  %v3674_v35 = vld [vmem:[%s4704_s0 + $0xac] ss:$12 sps:$4 sm:$0xff]   ;;  %v3676_v36 = vld [vmem:[%s4704_s0 + $0xa8] ss:$12 sps:$4 sm:$0xff]   ;;  %v3677_v37 = vld [vmem:[%s4704_s0 + $0xb0] ss:$12 sps:$4 sm:$0xff]  }
 0x134   : > { %v4785_v45 = vshrl.u32 %v697_v42, 7  ;;  %v4791_v47 = vld [vmem:[%s4698_s23] sm:$0xff]  ;;  %v742_v60 = vld [vmem:[%s4706_s12] sm:$0x7]  ;;  %vm990_vm1 = vcmask 261120   ;;  %vm1111_vm2 = vcmask 1043456  }
 0x135   : > { %3361 = vmatpush3.bf16.msra.mxu1 %v3657_v21  ;;  %vm1083_vm3 = vcmask 64512   ;;  %s4210_s11 = smov 96   ;;  %vm1203_vm4 = vcmask 257024   ;;  %s4211_s0 = smov 64   ;;  %vm1440_vm5 = vcmask 519424   ;;  %vm1677_vm6 = vcmask 781824  }
 0x136   : > { %892 = vmatpush1.bf16.msra.mxu0 %v3656_v20  ;;  %3362 = vmatprep.subr.bf16.mxu1 %v4207_v6  ;;  %v4788_v46 = vsub.s32 0, %v4785_v45  ;;  %v4797_v51 = vsub.s32 1, %v4785_v45  ;;  %v4808_v61 = vsub.s32 2, %v4785_v45  ;;  %s4212_s30 = smov 32   ;;  %vm1914_vm7 = vcmask 1044224  }
 0x137   : > { %893 = vmatprep.subr.bf16.mxu0 %v3658_v22 }
 0x138   : > { %v700_v50 = vrot.slane %v4791_v47, %v4788_v46  ;;  %v706_v55 = vrot.slane %v4791_v47, %v4797_v51  ;;  %v751_v62 = vrot.slane %v742_v60, %v4797_v51  ;;  %v755_v1 = vrot.slane %v742_v60, %v4808_v61 }
 0x139   : > { %3363 = vmatpush3.bf16.msra.mxu1 %v3661_v24  ;;  %v4845_v24 = vld [vmem:[%s5304_s8] sm:$0xff] }
 0x13a   : > { %894 = vmatpush1.bf16.msra.mxu0 %v3660_v23  ;;  %3364 = vmatprep.subr.bf16.mxu1 %v4207_v6 }
 0x13b   : > { %895 = vmatprep.subr.bf16.mxu0 %v3662_v25 }
 0x13d   : > { %3365 = vmatpush3.bf16.msra.mxu1 %v3665_v27 }
 0x13e   : > { %896 = vmatpush1.bf16.msra.mxu0 %v3664_v26  ;;  %3366 = vmatprep.subr.bf16.mxu1 %v4207_v6 }
 0x13f   : > { %897 = vmatprep.subr.bf16.mxu0 %v3666_v28 }
 0x141   : > { %3367 = vmatpush3.bf16.msra.mxu1 %v3669_v30 }
 0x142   : > { %898 = vmatpush1.bf16.msra.mxu0 %v3668_v29  ;;  %3368 = vmatprep.subr.bf16.mxu1 %v4207_v6 }
 0x143   : > { %899 = vmatprep.subr.bf16.mxu0 %v3670_v31 }
 0x145   : > { %3369 = vmatpush3.bf16.msra.mxu1 %v3673_v34 }
 0x146   : > { %900 = vmatpush1.bf16.msra.mxu0 %v3672_v33  ;;  %3370 = vmatprep.subr.bf16.mxu1 %v4207_v6 }
 0x147   : > { %901 = vmatprep.subr.bf16.mxu0 %v3674_v35 }
 0x149   : > { %3371 = vmatpush3.bf16.msra.mxu1 %v3677_v37 }
 0x14a   : > { %902 = vmatpush1.bf16.msra.mxu0 %v3676_v36  ;;  %3376 = vmatprep.subr.bf16.mxu1 %v4207_v6 }
 0x14b   : > { %3400 = vmatprep.subr.bf16.mxu0 %v4207_v6 }
 0x1b9   : > { %v675_v9 = vpop.xlane.xlu0 %674 }
 0x1ba   : > { %v679_v10 = vmul.f32 0.0078125, %v675_v9 }
 0x1bc   : > { %v4746_v11 = vsub.f32 %v671_v2, %v679_v10 }
 0x1bd   : > { %v677_v12 = vpop.xlane.xlu0 %676 }
 0x1be   : > { %v680_v13 = vmul.f32 0.0078125, %v677_v12  ;;  %v683_v14 = vmul.f32 %v4746_v11, %v4746_v11 }
 0x1c0   : > { %v4750_v15 = vsub.f32 %v672_v3, %v680_v13  ;;  %685 = vadd.xlane.f32.xlu1 %v683_v14 }
 0x1c2   : > { %v684_v16 = vmul.f32 %v4750_v15, %v4750_v15 }
 0x1c4   : > { %687 = vadd.xlane.f32.xlu1 %v684_v16 }
 0x24d   : > { %v686_v38 = vpop.xlane.xlu1 %685 }
 0x24e   : > { %v689_v39 = vmul.f32 0.0078125, %v686_v38 }
 0x250   : > { %v691_v40 = vadd.f32 1e-05, %v689_v39 }
 0x251   : > { %v688_v41 = vpop.xlane.xlu1 %687 }
 0x252   : > { %3767 = vrsqrt.f32 %v691_v40  ;;  %v690_v43 = vmul.f32 0.0078125, %v688_v41 }
 0x254   : > { %v692_v44 = vadd.f32 1e-05, %v690_v43 }
 0x256   : > { %3769 = vrsqrt.f32 %v692_v44 }
 0x25c   : > { %v3768_v48 = vpop.eup %3767 }
 0x25d   : > { %v695_v49 = vmul.f32 %v3768_v48, %v4746_v11  ;;  %v747_v11 = vrot.slane %v742_v60, %v4788_v46 }
 0x25f   : > { %v701_v54 = vmul.f32 %v700_v50, %v695_v49 }
 0x260   : > { %v3770_v52 = vpop.eup %3769 }
 0x261   : > { %v696_v53 = vmul.f32 %v3770_v52, %v4750_v15  ;;  %v707_v57 = vadd.f32 %v706_v55, %v701_v54 }
 0x263   : > { %v702_v56 = vmul.f32 %v700_v50, %v696_v53 }
 0x265   : > { %v708_v58 = vadd.f32 %v706_v55, %v702_v56 }
 0x267   : > { %v709_v59 = vpack.c.bf16 %v708_v58, %v707_v57 }
 0x269   : > { %920 = vmatmul.mubr.bf16.vlgmr.msra.gmra.mrb[0].mxu0 %v709_v59  ;;  %3373 = vmatmul.mubr.bf16.vlgmr.msra.gmra.mrb[0].mxu1 %v709_v59 }
 0x26a   : > { %3378 = vmatprep.mubr.msk.bf16.mxu1 %vm4209_vm0, %v4207_v6  ;;  %3402 = vmatprep.mubr.msk.bf16.mxu0 %vm4209_vm0, %v4207_v6 }
 0x33c   : > { %v921_v63 = vpop.f32.mrb[0].mxu0  ;;  %v964_v0 = vpop.f32.mrb[0].mxu1 }
 0x33d   : > { %v923_v2 = vpop.f32.mrb[1].mxu0  ;;  %v3374_v3 = vpop.f32.mrb[1].mxu1  ;;  %v922_v15 = vadd.f32 %v921_v63, %v747_v11  ;;  %v965_v18 = vadd.f32 %v964_v0, %v755_v1 }
 0x33e   : > { %v924_v4 = vadd.f32 %v923_v2, %v751_v62  ;;  %v925_v5 = vpop.f32.mrb[2].mxu0  ;;  %v967_v7 = vpop.f32.mrb[2].mxu1 }
 0x33f   : > { %v4812_v8 = vadd.f32 %v967_v7, %v755_v1  ;;  %v927_v9 = vpop.f32.mrb[3].mxu0  ;;  %v3375_v10 = vpop.f32.mrb[3].mxu1  ;;  %v4822_v17 = vpack.c.bf16 %v922_v15, %v922_v15  ;;  %v926_v20 = vadd.f32 %v925_v5, %v747_v11  ;;  %v4831_v21 = vpack.c.bf16 %v965_v18, %v965_v18 }
 0x340   : > { %v4815_v12 = vpack.c.bf16 %v924_v4, %v924_v4  ;;  %v928_v13 = vadd.f32 %v927_v9, %v751_v62 }
 0x341   : > { %v4833_v22 = vpack.c.bf16 %v926_v20, %v926_v20  ;;  %v1113_v23 = vsel %vm1111_vm2, %v4831_v21, 0  ;;  %v4865_v58 = vpack.c.bf16 %v4812_v8, %v4812_v8 }
 0x342   : > { %v995_v14 = vsel %vm990_vm1, %v4815_v12, 0  ;;  %v4820_v16 = vpack.c.bf16 %v928_v13, %v928_v13 }
 0x343   : > { %3377 = vmatpush3.bf16.xpose.msra.mxu1 %v995_v14  ;;  %v1159_v63 = vsel %vm1111_vm2, %v4865_v58, 0 }
 0x344   : > { %3382 = vmatprep.subr.bf16.mxu1 %v4207_v6  ;;  %v1041_v19 = vsel %vm990_vm1, %v4820_v16, 0 }
 0x34a   : > { %3379 = vmatmul.mubr.msk.bf16.vlgmr.msra.gmra.mrb[4].mxu1 %vm990_vm1, %v4822_v17 }
 0x34b   : > { %3383 = vmatpush3.bf16.xpose.msra.mxu1 %v1041_v19  ;;  %3384 = vmatprep.mubr.msk.bf16.mxu1 %vm4209_vm0, %v4207_v6 }
 0x34c   : > { %3388 = vmatprep.subr.bf16.mxu1 %v4207_v6 }
 0x352   : > { %3385 = vmatmul.mubr.msk.bf16.vlgmr.msra.gmra.mrb[8].mxu1 %vm990_vm1, %v4833_v22 }
 0x353   : > { %3389 = vmatpush3.bf16.msra.mxu1 %v1113_v23  ;;  %3390 = vmatprep.mubr.msk.bf16.mxu1 %vm4209_vm0, %v4207_v6 }
 0x354   : > { %3394 = vmatprep.subr.bf16.mxu1 %v4207_v6 }
 0x41d   : > { %v1031_v25 = vpop.f32.mrb[4].mxu1 }
 0x41e   : > { %v1032_v26 = vadd.f32 %v1031_v25, %v4845_v24  ;;  %v3380_v27 = vpop.f32.mrb[5].mxu1 }
 0x41f   : > { %v1034_v28 = vpop.f32.mrb[6].mxu1 }
 0x420   : > { %v3381_v29 = vpop.f32.mrb[7].mxu1  ;;  %v1084_v30 = vsel %vm1083_vm3, %v1032_v26, -inf }
 0x421   : > { %1085 = vmax.xlane.f32.xlu0 %v1084_v30 }
 0x425   : > { %v1077_v31 = vpop.f32.mrb[8].mxu1 }
 0x426   : > { %v1078_v33 = vadd.f32 %v1077_v31, %v4845_v24  ;;  %v3386_v34 = vpop.f32.mrb[9].mxu1 }
 0x427   : > { %v1080_v35 = vpop.f32.mrb[10].mxu1 }
 0x428   : > { %v3387_v36 = vpop.f32.mrb[11].mxu1  ;;  %v1087_v37 = vsel %vm1083_vm3, %v1078_v33, -inf }
 0x429   : > { %1088 = vmax.xlane.f32.xlu1 %v1087_v37 }
 0x43a   : > { %1258 = vrot.lane.b32.xlu1 %v4820_v16, %s4210_s11 }
 0x4ae   : > { %v1086_v38 = vpop.xlane.xlu0 %1085 }
 0x4af   : > { %v1090_v39 = vsub.f32 %v1032_v26, %v1086_v38 }
 0x4b1   : > { %v1092_v40 = vmul.f32 1.442695, %v1090_v39 }
 0x4b3   : > { %3771 = vpow2.f32 %v1092_v40 }
 0x4b6   : > { %v1089_v41 = vpop.xlane.xlu1 %1088 }
 0x4b7   : > { %v1091_v42 = vsub.f32 %v1078_v33, %v1089_v41 }
 0x4b9   : > { %v1094_v43 = vmul.f32 1.442695, %v1091_v42 }
 0x4ba   : > { %v1259_v53 = vpop.permute.xlu1 %1258 }
 0x4bb   : > { %3773 = vpow2.f32 %v1094_v43  ;;  %v1264_v3 = vsel %vm990_vm1, %v1259_v53, 0 }
 0x4bd   : > { %v3772_v44 = vpop.eup %3771 }
 0x4be   : > { %v1096_v48 = vsel %vm1083_vm3, %v3772_v44, 0.0 }
 0x4bf   : > { %1097 = vadd.xlane.f32.xlu0 %v1096_v48 }
 0x4c5   : > { %v3774_v49 = vpop.eup %3773 }
 0x4c6   : > { %v1099_v50 = vsel %vm1083_vm3, %v3774_v49, 0.0 }
 0x4c7   : > { %1100 = vadd.xlane.f32.xlu1 %v1099_v50 }
 0x4d5   : > { %1208 = vrot.lane.b32.xlu0 %v4815_v12, %s4210_s11 }
 0x4d8   : > { %1206 = vrot.lane.b32.xlu1 %v4822_v17, %s4210_s11 }
 0x4dc   : > { %1256 = vrot.lane.b32.xlu1 %v4833_v22, %s4210_s11 }
 0x54c   : > { %v1098_v52 = vpop.xlane.xlu0 %1097 }
 0x54d   : > { %3775 = vrcp.f32 %v1098_v52 }
 0x550   : > { %v1209_v54 = vpop.permute.xlu0 %1208 }
 0x551   : > { %v1214_v55 = vsel %vm990_vm1, %v1209_v54, 0 }
 0x552   : > { %3401 = vmatpush3.bf16.xpose.msra.mxu0 %v1214_v55 }
 0x553   : > { %3412 = vmatprep.subr.bf16.mxu0 %v4207_v6 }
 0x554   : > { %v1101_v56 = vpop.xlane.xlu1 %1100 }
 0x555   : > { %3777 = vrcp.f32 %v1101_v56 }
 0x557   : > { %v3776_v57 = vpop.eup %3775 }
 0x558   : > { %v1104_v59 = vmul.f32 %v3776_v57, %v3772_v44  ;;  %v1207_v60 = vpop.permute.xlu1 %1206 }
 0x559   : > { %3403 = vmatmul.mubr.msk.bf16.vlgmr.msra.gmra.mrb[4].mxu0 %vm990_vm1, %v1207_v60 }
 0x55a   : > { %v1106_v62 = vpack.c.bf16 %v1104_v59, %v1104_v59  ;;  %3414 = vmatprep.mubr.msk.bf16.mxu0 %vm4209_vm0, %v4207_v6 }
 0x55c   : > { %3391 = vmatmul.mubr.msk.bf16.vlgmr.msra.gmra.mrb[12].mxu1 %vm1083_vm3, %v1106_v62  ;;  %v1257_v4 = vpop.permute.xlu1 %1256 }
 0x55d   : > { %3395 = vmatpush3.bf16.msra.mxu1 %v1159_v63  ;;  %3396 = vmatprep.mubr.msk.bf16.mxu1 %vm4209_vm0, %v4207_v6 }
 0x55e   : > { %3406 = vmatprep.subr.bf16.mxu1 %v4207_v6 }
 0x55f   : > { %v3778_v0 = vpop.eup %3777 }
 0x560   : > { %v1105_v1 = vmul.f32 %v3778_v0, %v3774_v49 }
 0x562   : > { %v1107_v2 = vpack.c.bf16 %v1105_v1, %v1105_v1 }
 0x564   : > { %3397 = vmatmul.mubr.msk.bf16.vlgmr.msra.gmra.mrb[16].mxu1 %vm1083_vm3, %v1107_v2 }
 0x565   : > { %3408 = vmatprep.mubr.msk.bf16.mxu1 %vm4209_vm0, %v4207_v6 }
 0x566   : > { %3407 = vmatpush3.bf16.xpose.msra.mxu1 %v1264_v3 }
 0x567   : > { %3418 = vmatprep.subr.bf16.mxu1 %v4207_v6 }
 0x56d   : > { %3409 = vmatmul.mubr.msk.bf16.vlgmr.msra.gmra.mrb[20].mxu1 %vm990_vm1, %v1257_v4 }
 0x56e   : > { %3420 = vmatprep.mubr.msk.bf16.mxu1 %vm4209_vm0, %v4207_v6 }
 0x62c   : > { %v1250_v5 = vpop.f32.mrb[4].mxu0 }
 0x62d   : > { %v1251_v7 = vadd.f32 %v1250_v5, %v4845_v24  ;;  %v3404_v8 = vpop.f32.mrb[5].mxu0 }
 0x62e   : > { %v1253_v9 = vpop.f32.mrb[6].mxu0 }
 0x62f   : > { %v1149_v10 = vpop.f32.mrb[12].mxu1  ;;  %v3405_v11 = vpop.f32.mrb[7].mxu0  ;;  %v1306_v13 = vsel %vm1083_vm3, %v1251_v7, -inf }
 0x630   : > { %v1201_v14 = vpack.c.bf16 %v1149_v10, %v1149_v10  ;;  %1307 = vmax.xlane.f32.xlu0 %v1306_v13  ;;  %v3392_v15 = vpop.f32.mrb[13].mxu1 }
 0x631   : > { %v1152_v18 = vpop.f32.mrb[14].mxu1 }
 0x632   : > { %1204 = vst.msk [vmem:[#allocation2] sm:$0xf] %vm1203_vm4, %v1201_v14  ;;  %v3393_v19 = vpop.f32.mrb[15].mxu1 }
 0x637   : > { %v1195_v20 = vpop.f32.mrb[16].mxu1 }
 0x638   : > { %v1202_v23 = vpack.c.bf16 %v1195_v20, %v1195_v20  ;;  %v3398_v25 = vpop.f32.mrb[17].mxu1 }
 0x639   : > { %v1198_v26 = vpop.f32.mrb[18].mxu1 }
 0x63a   : > { %1205 = vst.msk [vmem:[#allocation2 + $0x4] sm:$0xf] %vm1203_vm4, %v1202_v23  ;;  %v3399_v27 = vpop.f32.mrb[19].mxu1 }
 0x640   : > { %v1300_v28 = vpop.f32.mrb[20].mxu1 }
 0x641   : > { %v1301_v29 = vadd.f32 %v1300_v28, %v4845_v24  ;;  %v3410_v30 = vpop.f32.mrb[21].mxu1 }
 0x642   : > { %v1303_v31 = vpop.f32.mrb[22].mxu1 }
 0x643   : > { %v3411_v33 = vpop.f32.mrb[23].mxu1  ;;  %v1309_v34 = vsel %vm1083_vm3, %v1301_v29, -inf }
 0x644   : > { %1310 = vmax.xlane.f32.xlu1 %v1309_v34 }
 0x655   : > { %1378 = vrot.lane.b32.xlu1 %v4865_v58, %s4210_s11 }
 0x659   : > { %1445 = vrot.lane.b32.xlu1 %v4815_v12, %s4211_s0 }
 0x65d   : > { %1495 = vrot.lane.b32.xlu1 %v4820_v16, %s4211_s0 }
 0x661   : > { %1493 = vrot.lane.b32.xlu1 %v4833_v22, %s4211_s0 }
 0x6bd   : > { %v1308_v35 = vpop.xlane.xlu0 %1307 }
 0x6be   : > { %v1312_v36 = vsub.f32 %v1251_v7, %v1308_v35 }
 0x6c0   : > { %v1314_v37 = vmul.f32 1.442695, %v1312_v36 }
 0x6c2   : > { %3779 = vpow2.f32 %v1314_v37 }
 0x6cc   : > { %v3780_v38 = vpop.eup %3779 }
 0x6cd   : > { %v1318_v39 = vsel %vm1083_vm3, %v3780_v38, 0.0 }
 0x6ce   : > { %1319 = vadd.xlane.f32.xlu0 %v1318_v39 }
 0x6d1   : > { %v1311_v40 = vpop.xlane.xlu1 %1310 }
 0x6d2   : > { %v1313_v41 = vsub.f32 %v1301_v29, %v1311_v40 }
 0x6d4   : > { %v1316_v42 = vmul.f32 1.442695, %v1313_v41 }
 0x6d5   : > { %v1379_v43 = vpop.permute.xlu1 %1378 }
 0x6d6   : > { %3781 = vpow2.f32 %v1316_v42  ;;  %v1384_v44 = vsel %vm1111_vm2, %v1379_v43, 0 }
 0x6d7   : > { %3419 = vmatpush3.bf16.msra.mxu1 %v1384_v44 }
 0x6d8   : > { %3430 = vmatprep.subr.bf16.mxu1 %v4207_v6 }
 0x6d9   : > { %v1446_v57 = vpop.permute.xlu1 %1445 }
 0x6da   : > { %v1451_v0 = vsel %vm990_vm1, %v1446_v57, 0 }
 0x6dd   : > { %v1496_v63 = vpop.permute.xlu1 %1495 }
 0x6de   : > { %v1501_v2 = vsel %vm990_vm1, %v1496_v63, 0 }
 0x6e0   : > { %v3782_v48 = vpop.eup %3781 }
 0x6e1   : > { %v1321_v49 = vsel %vm1083_vm3, %v3782_v48, 0.0  ;;  %v1494_v4 = vpop.permute.xlu1 %1493 }
 0x6e2   : > { %1322 = vadd.xlane.f32.xlu0 %v1321_v49 }
 0x6f8   : > { %1330 = vrot.lane.b32.xlu0 %v4831_v21, %s4210_s11 }
 0x6fc   : > { %1443 = vrot.lane.b32.xlu0 %v4822_v17, %s4211_s0 }
 0x75b   : > { %v1320_v50 = vpop.xlane.xlu0 %1319 }
 0x75c   : > { %3783 = vrcp.f32 %v1320_v50 }
 0x766   : > { %v3784_v52 = vpop.eup %3783 }
 0x767   : > { %v1326_v54 = vmul.f32 %v3784_v52, %v3780_v38 }
 0x769   : > { %v1328_v59 = vpack.c.bf16 %v1326_v54, %v1326_v54 }
 0x76f   : > { %v1323_v53 = vpop.xlane.xlu0 %1322 }
 0x770   : > { %3785 = vrcp.f32 %v1323_v53 }
 0x773   : > { %v1331_v55 = vpop.permute.xlu0 %1330 }
 0x774   : > { %v1336_v56 = vsel %vm1111_vm2, %v1331_v55, 0 }
 0x775   : > { %3413 = vmatpush3.bf16.msra.mxu0 %v1336_v56 }
 0x776   : > { %3424 = vmatprep.subr.bf16.mxu0 %v4207_v6 }
 0x777   : > { %v1444_v3 = vpop.permute.xlu0 %1443 }
 0x778   : > { %3415 = vmatmul.mubr.msk.bf16.vlgmr.msra.gmra.mrb[8].mxu0 %vm1083_vm3, %v1328_v59 }
 0x779   : > { %3426 = vmatprep.mubr.msk.bf16.mxu0 %vm4209_vm0, %v4207_v6 }
 0x77a   : > { %v3786_v60 = vpop.eup %3785 }
 0x77b   : > { %v1327_v62 = vmul.f32 %v3786_v60, %v3782_v48 }
 0x77d   : > { %v1329_v1 = vpack.c.bf16 %v1327_v62, %v1327_v62 }
 0x77e   : > { %3425 = vmatpush3.bf16.xpose.msra.mxu0 %v1451_v0 }
 0x77f   : > { %3421 = vmatmul.mubr.msk.bf16.vlgmr.msra.gmra.mrb[24].mxu1 %vm1083_vm3, %v1329_v1  ;;  %3436 = vmatprep.subr.bf16.mxu0 %v4207_v6 }
 0x780   : > { %3431 = vmatpush3.bf16.xpose.msra.mxu1 %v1501_v2  ;;  %3432 = vmatprep.mubr.msk.bf16.mxu1 %vm4209_vm0, %v4207_v6 }
 0x781   : > { %3442 = vmatprep.subr.bf16.mxu1 %v4207_v6 }
 0x785   : > { %3427 = vmatmul.mubr.msk.bf16.vlgmr.msra.gmra.mrb[12].mxu0 %vm990_vm1, %v1444_v3 }
 0x786   : > { %3438 = vmatprep.mubr.msk.bf16.mxu0 %vm4209_vm0, %v4207_v6 }
 0x787   : > { %3433 = vmatmul.mubr.msk.bf16.vlgmr.msra.gmra.mrb[28].mxu1 %vm990_vm1, %v1494_v4 }
 0x788   : > { %3444 = vmatprep.mubr.msk.bf16.mxu1 %vm4209_vm0, %v4207_v6 }
 0x84b   : > { %v4922_v5 = vpop.f32.mrb[8].mxu0 }
 0x84c   : > { %v3416_v7 = vpop.f32.mrb[9].mxu0 }
 0x84d   : > { %v1375_v8 = vpop.f32.mrb[10].mxu0 }
 0x84e   : > { %v3417_v9 = vpop.f32.mrb[11].mxu0 }
 0x852   : > { %v4924_v10 = vpop.f32.mrb[24].mxu1 }
 0x853   : > { %v3422_v11 = vpop.f32.mrb[25].mxu1 }
 0x854   : > { %v1423_v13 = vpop.f32.mrb[26].mxu1 }
 0x855   : > { %v3423_v14 = vpop.f32.mrb[27].mxu1 }
 0x858   : > { %v1487_v15 = vpop.f32.mrb[12].mxu0 }
 0x859   : > { %v1488_v18 = vadd.f32 %v1487_v15, %v4845_v24  ;;  %v3428_v19 = vpop.f32.mrb[13].mxu0 }
 0x85a   : > { %v1490_v20 = vpop.f32.mrb[14].mxu0  ;;  %v1537_v23 = vpop.f32.mrb[28].mxu1 }
 0x85b   : > { %v1538_v25 = vadd.f32 %v1537_v23, %v4845_v24  ;;  %v3429_v26 = vpop.f32.mrb[15].mxu0  ;;  %v3434_v27 = vpop.f32.mrb[29].mxu1  ;;  %v1543_v28 = vsel %vm1083_vm3, %v1488_v18, -inf }
 0x85c   : > { %1544 = vmax.xlane.f32.xlu0 %v1543_v28  ;;  %v1540_v29 = vpop.f32.mrb[30].mxu1  ;;  %v3255_v28 = vpack.c.bf16 %v4922_v5, %v4922_v5 }
 0x85d   : > { %v3435_v30 = vpop.f32.mrb[31].mxu1  ;;  %v1546_v31 = vsel %vm1083_vm3, %v1538_v25, -inf }
 0x85e   : > { %1547 = vmax.xlane.f32.xlu1 %v1546_v31 }
 0x86f   : > { %1615 = vrot.lane.b32.xlu1 %v4865_v58, %s4211_s0 }
 0x873   : > { %1682 = vrot.lane.b32.xlu1 %v4815_v12, %s4212_s30 }
 0x877   : > { %1732 = vrot.lane.b32.xlu1 %v4820_v16, %s4212_s30 }
 0x87b   : > { %1730 = vrot.lane.b32.xlu1 %v4833_v22, %s4212_s30 }
 0x8e9   : > { %v1545_v33 = vpop.xlane.xlu0 %1544 }
 0x8ea   : > { %v1549_v34 = vsub.f32 %v1488_v18, %v1545_v33 }
 0x8eb   : > { %v1548_v35 = vpop.xlane.xlu1 %1547 }
 0x8ec   : > { %v1551_v36 = vmul.f32 1.442695, %v1549_v34  ;;  %v1550_v37 = vsub.f32 %v1538_v25, %v1548_v35 }
 0x8ee   : > { %3787 = vpow2.f32 %v1551_v36  ;;  %v1553_v38 = vmul.f32 1.442695, %v1550_v37 }
 0x8ef   : > { %v1616_v39 = vpop.permute.xlu1 %1615 }
 0x8f0   : > { %3789 = vpow2.f32 %v1553_v38  ;;  %v1621_v40 = vsel %vm1111_vm2, %v1616_v39, 0 }
 0x8f1   : > { %3443 = vmatpush3.bf16.msra.mxu1 %v1621_v40 }
 0x8f2   : > { %3454 = vmatprep.subr.bf16.mxu1 %v4207_v6 }
 0x8f3   : > { %v1683_v50 = vpop.permute.xlu1 %1682 }
 0x8f7   : > { %v1733_v56 = vpop.permute.xlu1 %1732 }
 0x8f8   : > { %v3788_v12 = vpop.eup %3787  ;;  %v1738_v59 = vsel %vm990_vm1, %v1733_v56, 0  ;;  %v3679_v56 = vld [vmem:[%s4712_s26 + $0x8] sm:$0xff]  }
 0x8f9   : > { %v1555_v16 = vsel %vm1083_vm3, %v3788_v12, 0.0 }
 0x8fa   : > { %v3790_v41 = vpop.eup %3789  ;;  %1556 = vadd.xlane.f32.xlu0 %v1555_v16 }
 0x8fb   : > { %v1558_v22 = vsel %vm1083_vm3, %v3790_v41, 0.0  ;;  %v1731_v62 = vpop.permute.xlu1 %1730 }
 0x8fe   : > { %1559 = vadd.xlane.f32.xlu0 %v1558_v22 }
 0x914   : > { %1567 = vrot.lane.b32.xlu0 %v4831_v21, %s4211_s0 }
 0x918   : > { %1680 = vrot.lane.b32.xlu0 %v4822_v17, %s4212_s30  ;;  %v1688_v17 = vsel %vm990_vm1, %v1683_v50, 0 }
 0x987   : > { %v1557_v42 = vpop.xlane.xlu0 %1556 }
 0x988   : > { %3791 = vrcp.f32 %v1557_v42 }
 0x98b   : > { %v1560_v43 = vpop.xlane.xlu0 %1559 }
 0x98c   : > { %3793 = vrcp.f32 %v1560_v43 }
 0x98f   : > { %v1568_v44 = vpop.permute.xlu0 %1567 }
 0x990   : > { %v1573_v48 = vsel %vm1111_vm2, %v1568_v44, 0 }
 0x991   : > { %3437 = vmatpush3.bf16.msra.mxu0 %v1573_v48 }
 0x992   : > { %v3792_v49 = vpop.eup %3791  ;;  %3448 = vmatprep.subr.bf16.mxu0 %v4207_v6 }
 0x993   : > { %v1563_v52 = vmul.f32 %v3792_v49, %v3788_v12  ;;  %v1681_v60 = vpop.permute.xlu0 %1680 }
 0x995   : > { %v1565_v53 = vpack.c.bf16 %v1563_v52, %v1563_v52 }
 0x996   : > { %v3794_v54 = vpop.eup %3793 }
 0x997   : > { %v1564_v55 = vmul.f32 %v3794_v54, %v3790_v41  ;;  %3439 = vmatmul.mubr.msk.bf16.vlgmr.msra.gmra.mrb[16].mxu0 %vm1083_vm3, %v1565_v53 }
 0x998   : > { %3450 = vmatprep.mubr.msk.bf16.mxu0 %vm4209_vm0, %v4207_v6 }
 0x999   : > { %v1566_v57 = vpack.c.bf16 %v1564_v55, %v1564_v55  ;;  %v3678_v55 = vld [vmem:[%s4712_s26] sm:$0xff]  }
 0x99a   : > { %3449 = vmatpush3.bf16.xpose.msra.mxu0 %v1688_v17  ;;  %v3680_v17 = vld [vmem:[%s4712_s26 + $0x10] sm:$0xff]  }
 0x99b   : > { %3445 = vmatmul.mubr.msk.bf16.vlgmr.msra.gmra.mrb[32].mxu1 %vm1083_vm3, %v1566_v57  ;;  %3460 = vmatprep.subr.bf16.mxu0 %v4207_v6  ;;  %v3681_v57 = vld [vmem:[%s4712_s26 + $0x18] sm:$0xff]  }
 0x99c   : > { %3455 = vmatpush3.bf16.xpose.msra.mxu1 %v1738_v59  ;;  %3456 = vmatprep.mubr.msk.bf16.mxu1 %vm4209_vm0, %v4207_v6  ;;  %v3682_v59 = vld [vmem:[%s4712_s26 + $0x20] sm:$0xff]  }
 0x99d   : > { %3466 = vmatprep.subr.bf16.mxu1 %v4207_v6 }
 0x9a1   : > { %3451 = vmatmul.mubr.msk.bf16.vlgmr.msra.gmra.mrb[20].mxu0 %vm990_vm1, %v1681_v60  ;;  %v3683_v60 = vld [vmem:[%s4712_s26 + $0x28] sm:$0xff]  }
 0x9a2   : > { %3462 = vmatprep.mubr.msk.bf16.mxu0 %vm4209_vm0, %v4207_v6 }
 0x9a3   : > { %3457 = vmatmul.mubr.msk.bf16.vlgmr.msra.gmra.mrb[36].mxu1 %vm990_vm1, %v1731_v62  ;;  %v3684_v62 = vld [vmem:[%s4712_s26 + $0x30] sm:$0xff]  }
 0x9a4   : > { %3468 = vmatprep.mubr.msk.bf16.mxu1 %vm4209_vm0, %v4207_v6 }
 0xa6a   : > { %v1609_v63 = vpop.f32.mrb[16].mxu0 }
 0xa6b   : > { %v3440_v0 = vpop.f32.mrb[17].mxu0  ;;  %v3257_v41 = vpack.c.bf16 %v1609_v63, %v1609_v63  ;;  %v3685_v63 = vld [vmem:[%s4712_s26 + $0x38] sm:$0xff]  }
 0xa6c   : > { %v1612_v1 = vpop.f32.mrb[18].mxu0 }
 0xa6d   : > { %v3441_v2 = vpop.f32.mrb[19].mxu0 }
 0xa6e   : > { %v1657_v3 = vpop.f32.mrb[32].mxu1 }
 0xa6f   : > { %v3446_v4 = vpop.f32.mrb[33].mxu1  ;;  %v3258_v29 = vpack.c.bf16 %v1657_v3, %v1657_v3 }
 0xa70   : > { %v1660_v7 = vpop.f32.mrb[34].mxu1 }
 0xa71   : > { %v3447_v8 = vpop.f32.mrb[35].mxu1 }
 0xa74   : > { %v1724_v9 = vpop.f32.mrb[20].mxu0 }
 0xa75   : > { %v1725_v11 = vadd.f32 %v1724_v9, %v4845_v24  ;;  %v3452_v13 = vpop.f32.mrb[21].mxu0 }
 0xa76   : > { %v1727_v14 = vpop.f32.mrb[22].mxu0  ;;  %v1774_v15 = vpop.f32.mrb[36].mxu1 }
 0xa77   : > { %v1775_v18 = vadd.f32 %v1774_v15, %v4845_v24  ;;  %v3453_v19 = vpop.f32.mrb[23].mxu0  ;;  %v3458_v20 = vpop.f32.mrb[37].mxu1  ;;  %v1780_v23 = vsel %vm1083_vm3, %v1725_v11, -inf  ;;  %v3256_v24 = vpack.c.bf16 %v4924_v10, %v4924_v10 }
 0xa78   : > { %1781 = vmax.xlane.f32.xlu0 %v1780_v23  ;;  %v1777_v25 = vpop.f32.mrb[38].mxu1 }
 0xa79   : > { %v3459_v26 = vpop.f32.mrb[39].mxu1  ;;  %v1783_v27 = vsel %vm1083_vm3, %v1775_v18, -inf }
 0xa7a   : > { %1784 = vmax.xlane.f32.xlu1 %v1783_v27  ;;  %v3839_v27 = vld [vmem:[%s4731_s19] sm:$0xff] }
 0xa8b   : > { %1852 = vrot.lane.b32.xlu1 %v4865_v58, %s4212_s30 }
 0xa8f   : > { %1434 = vrot.lane.b32.xlu1 %v3255_v28, %s4212_s30 }
 0xa93   : > { %1436 = vrot.lane.b32.xlu1 %v3256_v24, %s4212_s30 }
 0xa97   : > { %1673 = vrot.lane.b32.xlu1 %v3258_v29, %s4211_s0 }
 0xb05   : > { %v1782_v30 = vpop.xlane.xlu0 %1781 }
 0xb06   : > { %v1786_v31 = vsub.f32 %v1725_v11, %v1782_v30 }
 0xb07   : > { %v1785_v33 = vpop.xlane.xlu1 %1784 }
 0xb08   : > { %v1788_v34 = vmul.f32 1.442695, %v1786_v31  ;;  %v1787_v35 = vsub.f32 %v1775_v18, %v1785_v33  ;;  %v1937_v18 = vsub.s32 4, %v4785_v45  ;;  %v3687_v31 = vld [vmem:[%s4714_s13] ss:$16 sps:$4 sm:$0xff]  }
 0xb09   : > { %v3689_v33 = vld [vmem:[%s4714_s13 + $0x4] ss:$16 sps:$4 sm:$0xff]  }
 0xb0a   : > { %3795 = vpow2.f32 %v1788_v34  ;;  %v1790_v58 = vmul.f32 1.442695, %v1787_v35  ;;  %v1938_v19 = vrot.slane %v4791_v47, %v1937_v18  ;;  %v3690_v34 = vld [vmem:[%s4714_s13 + $0x8] ss:$16 sps:$4 sm:$0xff]   ;;  %v3692_v35 = vld [vmem:[%s4714_s13 + $0xc] ss:$16 sps:$4 sm:$0xff]   ;;  %v2061_v18 = vrot.slane %v4791_v47, %v4808_v61 }
 0xb0b   : > { %v1853_v36 = vpop.permute.xlu1 %1852 }
 0xb0c   : > { %3797 = vpow2.f32 %v1790_v58  ;;  %v1858_v5 = vsel %vm1111_vm2, %v1853_v36, 0  ;;  %v3695_v58 = vld [vmem:[%s4714_s13 + $0x24] ss:$16 sps:$4 sm:$0xff]   ;;  %v3698_v36 = vld [vmem:[%s4714_s13 + $0x2c] ss:$16 sps:$4 sm:$0xff]  }
 0xb0d   : > { %3467 = vmatpush3.bf16.msra.mxu1 %v1858_v5  ;;  %v3693_v5 = vld [vmem:[%s4714_s13 + $0x20] ss:$16 sps:$4 sm:$0xff]  }
 0xb0e   : > { %2285 = vmatprep.subr.bf16.mxu1 %v3689_v33  ;;  %v3735_v33 = vld [vmem:[%s4727_s10 + $0x40] sm:$0xff]  }
 0xb0f   : > { %v1435_v37 = vpop.permute.xlu1 %1434 }
 0xb10   : > { %1441 = vst.msk [vmem:[#allocation2] sm:$0xf] %vm1440_vm5, %v1435_v37  ;;  %v3696_v37 = vld [vmem:[%s4714_s13 + $0x28] ss:$16 sps:$4 sm:$0xff]  }
 0xb13   : > { %v1437_v10 = vpop.permute.xlu1 %1436 }
 0xb14   : > { %v3796_v38 = vpop.eup %3795  ;;  %1442 = vst.msk [vmem:[#allocation2 + $0x4] sm:$0xf] %vm1440_vm5, %v1437_v10 }
 0xb15   : > { %v1792_v39 = vsel %vm1083_vm3, %v3796_v38, 0.0 }
 0xb16   : > { %v3798_v40 = vpop.eup %3797  ;;  %1793 = vadd.xlane.f32.xlu0 %v1792_v39 }
 0xb17   : > { %v1674_v12 = vpop.permute.xlu1 %1673  ;;  %v1795_v16 = vsel %vm1083_vm3, %v3798_v40, 0.0 }
 0xb18   : > { %1679 = vst.msk [vmem:[#allocation2 + $0x4] sm:$0xf] %vm1677_vm6, %v1674_v12 }
 0xb1a   : > { %1796 = vadd.xlane.f32.xlu0 %v1795_v16 }
 0xb30   : > { %1804 = vrot.lane.b32.xlu0 %v4831_v21, %s4212_s30 }
 0xb34   : > { %1671 = vrot.lane.b32.xlu0 %v3257_v41, %s4211_s0 }
 0xba3   : > { %v1794_v22 = vpop.xlane.xlu0 %1793 }
 0xba4   : > { %3799 = vrcp.f32 %v1794_v22 }
 0xba7   : > { %v1797_v42 = vpop.xlane.xlu0 %1796 }
 0xba8   : > { %3801 = vrcp.f32 %v1797_v42  ;;  %v3701_v42 = vld [vmem:[%s4714_s13 + $0x44] ss:$16 sps:$4 sm:$0xff]  }
 0xbab   : > { %v1805_v43 = vpop.permute.xlu0 %1804 }
 0xbac   : > { %v1810_v44 = vsel %vm1111_vm2, %v1805_v43, 0  ;;  %v3704_v43 = vld [vmem:[%s4714_s13 + $0x4c] ss:$16 sps:$4 sm:$0xff]  }
 0xbad   : > { %3461 = vmatpush3.bf16.msra.mxu0 %v1810_v44  ;;  %v3699_v44 = vld [vmem:[%s4714_s13 + $0x40] ss:$16 sps:$4 sm:$0xff]  }
 0xbae   : > { %v3800_v48 = vpop.eup %3799  ;;  %3472 = vmatprep.subr.bf16.mxu0 %v4207_v6 }
 0xbaf   : > { %v1800_v49 = vmul.f32 %v3800_v48, %v3796_v38  ;;  %v1672_v50 = vpop.permute.xlu0 %1671  ;;  %v3702_v48 = vld [vmem:[%s4714_s13 + $0x48] ss:$16 sps:$4 sm:$0xff]  }
 0xbb0   : > { %1678 = vst.msk [vmem:[#allocation2] sm:$0xf] %vm1677_vm6, %v1672_v50  ;;  %v3710_v50 = vld [vmem:[%s4714_s13 + $0x6c] ss:$16 sps:$4 sm:$0xff]  }
 0xbb1   : > { %v1802_v21 = vpack.c.bf16 %v1800_v49, %v1800_v49  ;;  %v3707_v49 = vld [vmem:[%s4714_s13 + $0x64] ss:$16 sps:$4 sm:$0xff]  }
 0xbb2   : > { %v3802_v52 = vpop.eup %3801 }
 0xbb3   : > { %v1801_v53 = vmul.f32 %v3802_v52, %v3798_v40  ;;  %3463 = vmatmul.mubr.msk.bf16.vlgmr.msra.gmra.mrb[24].mxu0 %vm1083_vm3, %v1802_v21  ;;  %v3705_v21 = vld [vmem:[%s4714_s13 + $0x60] ss:$16 sps:$4 sm:$0xff]   ;;  %v3708_v52 = vld [vmem:[%s4714_s13 + $0x68] ss:$16 sps:$4 sm:$0xff]  }
 0xbb4   : > { %3488 = vmatprep.mubr.msk.bf16.mxu0 %vm4209_vm0, %v4207_v6  ;;  %3473 = vmatpush3.bf16.msra.mxu0 %v3678_v55  ;;  %v3711_v55 = vld [vmem:[%s4714_s13 + $0x80] ss:$16 sps:$4 sm:$0xff]  }
 0xbb5   : > { %v1803_v54 = vpack.c.bf16 %v1801_v53, %v1801_v53  ;;  %3474 = vmatprep.subr.bf16.mxu0 %v4207_v6  ;;  %v3713_v53 = vld [vmem:[%s4714_s13 + $0x84] ss:$16 sps:$4 sm:$0xff]  }
 0xbb7   : > { %3469 = vmatmul.mubr.msk.bf16.vlgmr.msra.gmra.mrb[40].mxu1 %vm1083_vm3, %v1803_v54  ;;  %v3716_v54 = vld [vmem:[%s4714_s13 + $0x8c] ss:$16 sps:$4 sm:$0xff]  }
 0xbb8   : > { %2317 = vmatprep.mubr.bf16.mxu1 %v4208_v32  ;;  %3475 = vmatpush3.bf16.msra.mxu0 %v3679_v56  ;;  %v3714_v56 = vld [vmem:[%s4714_s13 + $0x88] ss:$16 sps:$4 sm:$0xff]  }
 0xbb9   : > { %3476 = vmatprep.subr.bf16.mxu0 %v4207_v6  ;;  %2286 = vmatpush1.bf16.msra.mxu1 %v3687_v31 }
 0xbba   : > { %2287 = vmatprep.subr.bf16.mxu1 %v3695_v58  ;;  %v3738_v58 = vld [vmem:[%s4727_s10 + $0x80] sm:$0xff]  }
 0xbbc   : > { %3477 = vmatpush3.bf16.msra.mxu0 %v3680_v17  ;;  %v3719_v17 = vld [vmem:[%s4714_s13 + $0xa4] ss:$16 sps:$4 sm:$0xff]  }
 0xbbd   : > { %3478 = vmatprep.subr.bf16.mxu0 %v4207_v6  ;;  %2288 = vmatpush1.bf16.msra.mxu1 %v3693_v5  ;;  %v3741_v5 = vld [vmem:[%s4727_s10 + $0x8] sm:$0xff]  }
 0xbbe   : > { %2289 = vmatprep.subr.bf16.mxu1 %v3701_v42  ;;  %v3751_v42 = vld [vmem:[%s4727_s10 + $0x60] sm:$0xff]  }
 0xbc0   : > { %3479 = vmatpush3.bf16.msra.mxu0 %v3681_v57  ;;  %v3722_v57 = vld [vmem:[%s4714_s13 + $0xac] ss:$16 sps:$4 sm:$0xff]  }
 0xbc1   : > { %3480 = vmatprep.subr.bf16.mxu0 %v4207_v6  ;;  %2290 = vmatpush1.bf16.msra.mxu1 %v3699_v44  ;;  %v3753_v44 = vld [vmem:[%s4727_s10 + $0x20] sm:$0xff]  }
 0xbc2   : > { %2291 = vmatprep.subr.bf16.mxu1 %v3707_v49  ;;  %v3755_v49 = vld [vmem:[%s4727_s10 + $0x68] sm:$0xff]  }
 0xbc4   : > { %3481 = vmatpush3.bf16.msra.mxu0 %v3682_v59  ;;  %v3717_v59 = vld [vmem:[%s4714_s13 + $0xa0] ss:$16 sps:$4 sm:$0xff]  }
 0xbc5   : > { %3482 = vmatprep.subr.bf16.mxu0 %v4207_v6  ;;  %2292 = vmatpush1.bf16.msra.mxu1 %v3705_v21  ;;  %v3757_v21 = vld [vmem:[%s4727_s10 + $0x28] sm:$0xff]  }
 0xbc6   : > { %2293 = vmatprep.subr.bf16.mxu1 %v3713_v53  ;;  %v3759_v53 = vld [vmem:[%s4727_s10 + $0x70] sm:$0xff]  }
 0xbc8   : > { %3483 = vmatpush3.bf16.msra.mxu0 %v3683_v60  ;;  %v3720_v60 = vld [vmem:[%s4714_s13 + $0xa8] ss:$16 sps:$4 sm:$0xff]  }
 0xbc9   : > { %3484 = vmatprep.subr.bf16.mxu0 %v4207_v6  ;;  %2294 = vmatpush1.bf16.msra.mxu1 %v3711_v55  ;;  %v3761_v55 = vld [vmem:[%s4727_s10 + $0x30] sm:$0xff]  }
 0xbca   : > { %2295 = vmatprep.subr.bf16.mxu1 %v3719_v17  ;;  %v3763_v17 = vld [vmem:[%s4727_s10 + $0x78] sm:$0xff]  }
 0xbcc   : > { %3485 = vmatpush3.bf16.msra.mxu0 %v3684_v62  ;;  %v3725_v62 = vld [vmem:[%s4714_s13 + $0xc4] ss:$16 sps:$4 sm:$0xff]  }
 0xbcd   : > { %3486 = vmatprep.subr.bf16.mxu0 %v4207_v6  ;;  %2296 = vmatpush1.bf16.msra.mxu1 %v3717_v59  ;;  %v3765_v59 = vld [vmem:[%s4727_s10 + $0x38] sm:$0xff]  }
 0xbce   : > { %2297 = vmatprep.subr.bf16.mxu1 %v3725_v62  ;;  %v2103_v62 = vld [vmem:[%s4725_s18] sm:$0xf] }
 0xbd0   : > { %3487 = vmatpush3.bf16.msra.mxu0 %v3685_v63  ;;  %v3728_v63 = vld [vmem:[%s4714_s13 + $0xcc] ss:$16 sps:$4 sm:$0xff]  }
 0xbd1   : > { %2328 = vmatprep.subr.bf16.mxu0 %v3692_v35  ;;  %v3737_v35 = vld [vmem:[%s4727_s10] sm:$0xff]  }
 0xc86   : > { %v1846_v0 = vpop.f32.mrb[24].mxu0 }
 0xc87   : > { %v3259_v1 = vpack.c.bf16 %v1846_v0, %v1846_v0  ;;  %v3464_v2 = vpop.f32.mrb[25].mxu0  ;;  %v3723_v0 = vld [vmem:[%s4714_s13 + $0xc0] ss:$16 sps:$4 sm:$0xff]  }
 0xc88   : > { %v1849_v3 = vpop.f32.mrb[26].mxu0  ;;  %v3731_v2 = vld [vmem:[%s4714_s13 + $0xe4] ss:$16 sps:$4 sm:$0xff]   ;;  %2298 = vmatpush1.bf16.msra.mxu1 %v3723_v0  ;;  %v2116_v0 = vrot.slane %v2103_v62, %v4808_v61 }
 0xc89   : > { %1908 = vrot.lane.b32.xlu0 %v3259_v1, %s4210_s11  ;;  %v3465_v4 = vpop.f32.mrb[27].mxu0  ;;  %v3726_v1 = vld [vmem:[%s4714_s13 + $0xc8] ss:$16 sps:$4 sm:$0xff]   ;;  %v3734_v3 = vld [vmem:[%s4714_s13 + $0xec] ss:$16 sps:$4 sm:$0xff]   ;;  %2299 = vmatprep.subr.bf16.mxu1 %v3731_v2 }
 0xc8a   : > { %v1894_v7 = vpop.f32.mrb[40].mxu1  ;;  %v3729_v4 = vld [vmem:[%s4714_s13 + $0xe0] ss:$16 sps:$4 sm:$0xff]  }
 0xc8b   : > { %v3260_v8 = vpack.c.bf16 %v1894_v7, %v1894_v7  ;;  %v3470_v9 = vpop.f32.mrb[41].mxu1  ;;  %v3732_v7 = vld [vmem:[%s4714_s13 + $0xe8] ss:$16 sps:$4 sm:$0xff]  }
 0xc8c   : > { %v1897_v11 = vpop.f32.mrb[42].mxu1  ;;  %2300 = vmatpush1.bf16.msra.mxu1 %v3729_v4 }
 0xc8d   : > { %1910 = vrot.lane.b32.xlu1 %v3260_v8, %s4210_s11  ;;  %v3471_v13 = vpop.f32.mrb[43].mxu1  ;;  %3312 = vmatprep.subr.bf16.mxu1 %v3735_v33 }
 0xcfb   : > { %v1909_v14 = vpop.permute.xlu0 %1908 }
 0xcfc   : > { %1915 = vst.msk [vmem:[#allocation2] sm:$0xf] %vm1914_vm7, %v1909_v14 }
 0xcff   : > { %v1911_v6 = vpop.permute.xlu1 %1910 }
 0xd00   : > { %1916 = vst.msk [vmem:[#allocation2 + $0x4] sm:$0xf] %vm1914_vm7, %v1911_v6 }
 0xd07   : > { %v3686_v15 = vld [vmem:[#allocation2] sm:$0xff]  }
 0xd08   : > { %3489 = vmatmul.mubr.bf16.vlgmr.msra.gmra.mrb[28].mxu0 %v3686_v15 }
 0xd09   : > { %2360 = vmatprep.mubr.bf16.mxu0 %v4208_v32  ;;  %v3840_v32 = vld [vmem:[%s4731_s19 + $0x8] sm:$0xff]  ;;  %2329 = vmatpush1.bf16.msra.mxu0 %v3690_v34  ;;  %v3736_v34 = vld [vmem:[%s4727_s10 + $0xc0] sm:$0xff]  }
 0xd0a   : > { %2330 = vmatprep.subr.bf16.mxu0 %v3698_v36  ;;  %v3740_v36 = vld [vmem:[%s4727_s10 + $0xc8] sm:$0xff]  }
 0xd0d   : > { %2331 = vmatpush1.bf16.msra.mxu0 %v3696_v37  ;;  %v3742_v37 = vld [vmem:[%s4727_s10 + $0x88] sm:$0xff]  }
 0xd0e   : > { %2332 = vmatprep.subr.bf16.mxu0 %v3704_v43  ;;  %v3752_v43 = vld [vmem:[%s4727_s10 + $0xe0] sm:$0xff]  }
 0xd11   : > { %2333 = vmatpush1.bf16.msra.mxu0 %v3702_v48  ;;  %v3754_v48 = vld [vmem:[%s4727_s10 + $0xa0] sm:$0xff]  }
 0xd12   : > { %2334 = vmatprep.subr.bf16.mxu0 %v3710_v50  ;;  %v3756_v50 = vld [vmem:[%s4727_s10 + $0xe8] sm:$0xff]  }
 0xd15   : > { %2335 = vmatpush1.bf16.msra.mxu0 %v3708_v52  ;;  %v3758_v52 = vld [vmem:[%s4727_s10 + $0xa8] sm:$0xff]  }
 0xd16   : > { %2336 = vmatprep.subr.bf16.mxu0 %v3716_v54  ;;  %v3760_v54 = vld [vmem:[%s4727_s10 + $0xf0] sm:$0xff]  }
 0xd19   : > { %2337 = vmatpush1.bf16.msra.mxu0 %v3714_v56  ;;  %v3762_v56 = vld [vmem:[%s4727_s10 + $0xb0] sm:$0xff]  }
 0xd1a   : > { %2338 = vmatprep.subr.bf16.mxu0 %v3722_v57  ;;  %v3764_v57 = vld [vmem:[%s4727_s10 + $0xf8] sm:$0xff]  }
 0xd1d   : > { %2339 = vmatpush1.bf16.msra.mxu0 %v3720_v60  ;;  %v3766_v60 = vld [vmem:[%s4727_s10 + $0xb8] sm:$0xff]  }
 0xd1e   : > { %2340 = vmatprep.subr.bf16.mxu0 %v3728_v63  ;;  %v2108_v63 = vrot.slane %v2103_v62, %v4788_v46 }
 0xd21   : > { %2341 = vmatpush1.bf16.msra.mxu0 %v3726_v1  ;;  %v2112_v1 = vrot.slane %v2103_v62, %v4797_v51 }
 0xd22   : > { %2342 = vmatprep.subr.bf16.mxu0 %v3734_v3 }
 0xd25   : > { %2343 = vmatpush1.bf16.msra.mxu0 %v3732_v7 }
 0xd26   : > { %3334 = vmatprep.subr.bf16.mxu0 %v3736_v34 }
 0xddb   : > { %v2027_v20 = vpop.f32.mrb[28].mxu0 }
 0xddc   : > { %v2028_v23 = vadd.f32 %v2027_v20, %v1938_v19  ;;  %v3490_v25 = vpop.f32.mrb[29].mxu0  ;;  %v2066_v20 = vsub.s32 3, %v4785_v45 }
 0xddd   : > { %v2030_v26 = vpop.f32.mrb[30].mxu0 }
 0xdde   : > { %v5013_v28 = vadd.f32 %v3839_v27, %v2028_v23  ;;  %v2031_v24 = vadd.f32 %v2030_v26, %v1938_v19  ;;  %v3491_v29 = vpop.f32.mrb[31].mxu0  ;;  %v2067_v27 = vrot.slane %v4791_v47, %v2066_v20  ;;  %v3739_v47 = vld [vmem:[%s4727_s10 + $0x48] sm:$0xff]   ;;  %v2120_v2 = vrot.slane %v2103_v62, %v2066_v20 }
 0xde0   : > { %v5016_v30 = vadd.f32 %v3840_v32, %v2031_v24  ;;  %2036 = vadd.xlane.f32.xlu0 %v5013_v28 }
 0xde2   : > { %2038 = vadd.xlane.f32.xlu1 %v5016_v30 }
 0xe6d   : > { %v2037_v10 = vpop.xlane.xlu0 %2036 }
 0xe6e   : > { %v2040_v38 = vmul.f32 0.0078125, %v2037_v10  ;;  %v3743_v10 = vld [vmem:[%s4727_s10 + $0x50] sm:$0xff]  }
 0xe6f   : > { %v2039_v39 = vpop.xlane.xlu1 %2038 }
 0xe70   : > { %v5029_v40 = vsub.f32 %v5013_v28, %v2040_v38  ;;  %v2041_v12 = vmul.f32 0.0078125, %v2039_v39  ;;  %v3744_v38 = vld [vmem:[%s4727_s10 + $0xd0] sm:$0xff]  }
 0xe71   : > { %v3745_v39 = vld [vmem:[%s4727_s10 + $0x10] sm:$0xff]  }
 0xe72   : > { %v5032_v16 = vsub.f32 %v5016_v30, %v2041_v12  ;;  %v2044_v41 = vmul.f32 %v5029_v40, %v5029_v40  ;;  %v3747_v12 = vld [vmem:[%s4727_s10 + $0x58] sm:$0xff]  }
 0xe74   : > { %2046 = vadd.xlane.f32.xlu0 %v2044_v41  ;;  %v2045_v22 = vmul.f32 %v5032_v16, %v5032_v16  ;;  %v3749_v41 = vld [vmem:[%s4727_s10 + $0x18] sm:$0xff]  }
 0xe78   : > { %2048 = vadd.xlane.f32.xlu0 %v2045_v22  ;;  %v3750_v22 = vld [vmem:[%s4727_s10 + $0x98] sm:$0xff]  }
 0xf01   : > { %v2047_v8 = vpop.xlane.xlu0 %2046 }
 0xf02   : > { %v2050_v9 = vmul.f32 0.0078125, %v2047_v8 }
 0xf04   : > { %v2052_v11 = vadd.f32 1e-05, %v2050_v9 }
 0xf05   : > { %v2049_v13 = vpop.xlane.xlu0 %2048 }
 0xf06   : > { %3803 = vrsqrt.f32 %v2052_v11  ;;  %v2051_v14 = vmul.f32 0.0078125, %v2049_v13 }
 0xf08   : > { %v2053_v6 = vadd.f32 1e-05, %v2051_v14 }
 0xf0a   : > { %3805 = vrsqrt.f32 %v2053_v6 }
 0xf10   : > { %v3804_v15 = vpop.eup %3803 }
 0xf11   : > { %v2056_v19 = vmul.f32 %v3804_v15, %v5029_v40  ;;  %v3746_v40 = vld [vmem:[%s4727_s10 + $0x90] sm:$0xff]  }
 0xf13   : > { %v2062_v26 = vmul.f32 %v2061_v18, %v2056_v19 }
 0xf14   : > { %v3806_v23 = vpop.eup %3805 }
 0xf15   : > { %v2057_v25 = vmul.f32 %v3806_v23, %v5032_v16  ;;  %v2068_v29 = vadd.f32 %v2067_v27, %v2062_v26  ;;  %v3748_v16 = vld [vmem:[%s4727_s10 + $0xd8] sm:$0xff]  }
 0xf17   : > { %v2063_v24 = vmul.f32 %v2061_v18, %v2057_v25 }
 0xf19   : > { %v2069_v32 = vadd.f32 %v2067_v27, %v2063_v24 }
 0xf1b   : > { %v2070_v31 = vpack.c.bf16 %v2069_v32, %v2068_v29 }
 0xf1d   : > { %2318 = vmatmul.mubr.bf16.vlgmr.msra.gmra.mrb[44].mxu1 %v2070_v31  ;;  %2361 = vmatmul.mubr.bf16.vlgmr.msra.gmra.mrb[32].mxu0 %v2070_v31 }
 0xf1e   : > { %3313 = vmatpush3.bf16.msra.mxu1 %v3737_v35  ;;  %3335 = vmatpush3.bf16.msra.mxu0 %v3738_v58 }
 0xf1f   : > { %3314 = vmatprep.subr.bf16.mxu1 %v3739_v47  ;;  %3336 = vmatprep.subr.bf16.mxu0 %v3740_v36 }
 0xf22   : > { %3315 = vmatpush3.bf16.msra.mxu1 %v3741_v5  ;;  %3337 = vmatpush3.bf16.msra.mxu0 %v3742_v37 }
 0xf23   : > { %3316 = vmatprep.subr.bf16.mxu1 %v3743_v10  ;;  %3338 = vmatprep.subr.bf16.mxu0 %v3744_v38 }
 0xf26   : > { %3317 = vmatpush3.bf16.msra.mxu1 %v3745_v39  ;;  %3339 = vmatpush3.bf16.msra.mxu0 %v3746_v40 }
 0xf27   : > { %3318 = vmatprep.subr.bf16.mxu1 %v3747_v12  ;;  %3340 = vmatprep.subr.bf16.mxu0 %v3748_v16 }
 0xf2a   : > { %3319 = vmatpush3.bf16.msra.mxu1 %v3749_v41  ;;  %3341 = vmatpush3.bf16.msra.mxu0 %v3750_v22 }
 0xf2b   : > { %3320 = vmatprep.subr.bf16.mxu1 %v3751_v42  ;;  %3342 = vmatprep.subr.bf16.mxu0 %v3752_v43 }
 0xf2e   : > { %3321 = vmatpush3.bf16.msra.mxu1 %v3753_v44  ;;  %3343 = vmatpush3.bf16.msra.mxu0 %v3754_v48 }
 0xf2f   : > { %3322 = vmatprep.subr.bf16.mxu1 %v3755_v49  ;;  %3344 = vmatprep.subr.bf16.mxu0 %v3756_v50 }
 0xf32   : > { %3323 = vmatpush3.bf16.msra.mxu1 %v3757_v21  ;;  %3345 = vmatpush3.bf16.msra.mxu0 %v3758_v52 }
 0xf33   : > { %3324 = vmatprep.subr.bf16.mxu1 %v3759_v53  ;;  %3346 = vmatprep.subr.bf16.mxu0 %v3760_v54 }
 0xf36   : > { %3325 = vmatpush3.bf16.msra.mxu1 %v3761_v55  ;;  %3347 = vmatpush3.bf16.msra.mxu0 %v3762_v56 }
 0xf37   : > { %3326 = vmatprep.subr.bf16.mxu1 %v3763_v17  ;;  %3348 = vmatprep.subr.bf16.mxu0 %v3764_v57 }
 0xf3a   : > { %3327 = vmatpush3.bf16.msra.mxu1 %v3765_v59  ;;  %3349 = vmatpush3.bf16.msra.mxu0 %v3766_v60 }
 0xff0   : > { %v2319_v3 = vpop.f32.mrb[44].mxu1  ;;  %v2362_v4 = vpop.f32.mrb[32].mxu0 }
 0xff1   : > { %v5108_v7 = vadd.f32 %v2319_v3, %v2108_v63  ;;  %v5110_v8 = vadd.f32 %v2362_v4, %v2116_v0  ;;  %v2321_v9 = vpop.f32.mrb[45].mxu1  ;;  %v2364_v11 = vpop.f32.mrb[33].mxu0 }
 0xff2   : > { %v5112_v13 = vadd.f32 %v2321_v9, %v2112_v1  ;;  %v5114_v14 = vadd.f32 %v2364_v11, %v2120_v2  ;;  %v2323_v46 = vpop.f32.mrb[46].mxu1  ;;  %v2366_v6 = vpop.f32.mrb[34].mxu0 }
 0xff3   : > { %v3196_v61 = vmul.f32 -1.702, %v5108_v7  ;;  %v3198_v51 = vmul.f32 -1.702, %v5110_v8  ;;  %v2324_v15 = vadd.f32 %v2323_v46, %v2108_v63  ;;  %v2367_v18 = vadd.f32 %v2366_v6, %v2116_v0  ;;  %v2325_v19 = vpop.f32.mrb[47].mxu1  ;;  %v2368_v20 = vpop.f32.mrb[35].mxu0 }
 0xff4   : > { %v3197_v23 = vmul.f32 -1.702, %v5112_v13  ;;  %v3199_v25 = vmul.f32 -1.702, %v5114_v14  ;;  %v2326_v26 = vadd.f32 %v2325_v19, %v2112_v1  ;;  %v2369_v27 = vadd.f32 %v2368_v20, %v2120_v2 }
 0xff5   : > { %v2387_v24 = vmul.f32 1.442695, %v3196_v61  ;;  %v2391_v29 = vmul.f32 1.442695, %v3198_v51  ;;  %v3200_v32 = vmul.f32 -1.702, %v2324_v15 }
 0xff6   : > { %v2389_v31 = vmul.f32 1.442695, %v3197_v23  ;;  %v2393_v33 = vmul.f32 1.442695, %v3199_v25  ;;  %v3202_v34 = vmul.f32 -1.702, %v2367_v18 }
 0xff7   : > { %3807 = vpow2.f32 %v2387_v24  ;;  %v2395_v35 = vmul.f32 1.442695, %v3200_v32  ;;  %v3201_v58 = vmul.f32 -1.702, %v2326_v26  ;;  %v3203_v47 = vmul.f32 -1.702, %v2369_v27 }
 0xff8   : > { %3809 = vpow2.f32 %v2391_v29  ;;  %v2399_v36 = vmul.f32 1.442695, %v3202_v34  ;;  %v3841_v51 = vld [vmem:[%s4698_s23] sm:$0xff]  ;;  %s5305_s23 = sld [smem:[#allocation25_spill]] }
 0xff9   : > { %3811 = vpow2.f32 %v2389_v31  ;;  %v2397_v5 = vmul.f32 1.442695, %v3201_v58  ;;  %v2401_v37 = vmul.f32 1.442695, %v3203_v47 }
 0xffa   : > { %3813 = vpow2.f32 %v2393_v33 }
 0xffb   : > { %3815 = vpow2.f32 %v2395_v35 }
 0xffc   : > { %3817 = vpow2.f32 %v2399_v36 }
 0xffd   : > { %3819 = vpow2.f32 %v2397_v5 }
 0xffe   : > { %3821 = vpow2.f32 %v2401_v37  ;;  %p3236_p12 = scmp.eq.s32.totalorder %s5305_s23, 1 }
0x1001   : > { %v3808_v10 = vpop.eup %3807 }
0x1002   : > { %v3810_v38 = vpop.eup %3809  ;;  %v2403_v39 = vadd.f32 1.0, %v3808_v10 }
0x1003   : > { %v3812_v40 = vpop.eup %3811  ;;  %v2405_v12 = vadd.f32 1.0, %v3810_v38 }
0x1004   : > { %v3814_v16 = vpop.eup %3813  ;;  %3823 = vrcp.f32 %v2403_v39  ;;  %v2404_v41 = vadd.f32 1.0, %v3812_v40 }
0x1005   : > { %v3816_v22 = vpop.eup %3815  ;;  %3825 = vrcp.f32 %v2405_v12  ;;  %v2406_v42 = vadd.f32 1.0, %v3814_v16 }
0x1006   : > { %v3818_v43 = vpop.eup %3817  ;;  %3827 = vrcp.f32 %v2404_v41  ;;  %v2407_v44 = vadd.f32 1.0, %v3816_v22 }
0x1007   : > { %v3820_v48 = vpop.eup %3819  ;;  %3829 = vrcp.f32 %v2406_v42  ;;  %v2409_v49 = vadd.f32 1.0, %v3818_v43 }
0x1008   : > { %v3822_v50 = vpop.eup %3821  ;;  %3831 = vrcp.f32 %v2407_v44  ;;  %v2408_v21 = vadd.f32 1.0, %v3820_v48 }
0x1009   : > { %3833 = vrcp.f32 %v2409_v49  ;;  %v2410_v52 = vadd.f32 1.0, %v3822_v50 }
0x100a   : > { %3835 = vrcp.f32 %v2408_v21 }
0x100b   : > { %3837 = vrcp.f32 %v2410_v52 }
0x100e   : > { %v3824_v53 = vpop.eup %3823 }
0x100f   : > { %v3826_v54 = vpop.eup %3825  ;;  %v2427_v59 = vmul.f32 %v3824_v53, %v5108_v7  ;;  %v2505_v7 = vsub.s32 5, %v4785_v45 }
0x1010   : > { %v3828_v55 = vpop.eup %3827  ;;  %v2429_v63 = vmul.f32 %v3826_v54, %v5110_v8 }
0x1011   : > { %v3830_v56 = vpop.eup %3829  ;;  %v2428_v2 = vmul.f32 %v3828_v55, %v5112_v13 }
0x1012   : > { %v3832_v17 = vpop.eup %3831  ;;  %v2430_v9 = vmul.f32 %v3830_v56, %v5114_v14 }
0x1013   : > { %v3834_v57 = vpop.eup %3833  ;;  %v2431_v60 = vmul.f32 %v3832_v17, %v2324_v15  ;;  %v2506_v15 = vrot.slane %v3841_v51, %v2505_v7 }
0x1014   : > { %v3836_v62 = vpop.eup %3835  ;;  %v2433_v0 = vmul.f32 %v3834_v57, %v2367_v18 }
0x1015   : > { %v3838_v1 = vpop.eup %3837  ;;  %v2435_v3 = vpack.c.bf16 %v2431_v60, %v2427_v59  ;;  %v2432_v4 = vmul.f32 %v3836_v62, %v2326_v26 }
0x1016   : > { %v2437_v11 = vpack.c.bf16 %v2433_v0, %v2429_v63  ;;  %v2434_v46 = vmul.f32 %v3838_v1, %v2369_v27 }
0x1017   : > { %v2436_v6 = vpack.c.bf16 %v2432_v4, %v2428_v2 }
0x1018   : > { %v2438_v61 = vpack.c.bf16 %v2434_v46, %v2430_v9 }
0x1019   : > { %2731 = vmatprep.mubr.bf16.mxu1 %v2436_v6 }
0x101a   : > { %2772 = vmatprep.mubr.bf16.mxu0 %v2438_v61  ;;  %2732 = vmatmul.mubr.bf16.vlgmr.msra.gmra.mrb[48].mxu1 %v2435_v3 }
0x101b   : > { %2773 = vmatmul.mubr.bf16.vlgmr.msra.gmra.mrb[36].mxu0 %v2437_v11 }
0x10ed   : > { %v3328_v8 = vpop.f32.mrb[48].mxu1 }
0x10ee   : > { %v3350_v18 = vpop.f32.mrb[36].mxu0  ;;  %v3329_v19 = vpop.f32.mrb[49].mxu1 }
0x10ef   : > { %v3330_v13 = vadd.f32 %v3329_v19, %v3328_v8  ;;  %v3351_v20 = vpop.f32.mrb[37].mxu0  ;;  %v3331_v23 = vpop.f32.mrb[50].mxu1 }
0x10f0   : > { %v3352_v25 = vadd.f32 %v3351_v20, %v3350_v18  ;;  %v3353_v14 = vpop.f32.mrb[38].mxu0  ;;  %v3332_v26 = vpop.f32.mrb[51].mxu1 }
0x10f1   : > { %v2734_v27 = vadd.f32 %v3330_v13, %v2506_v15  ;;  %v3333_v24 = vadd.f32 %v3332_v26, %v3331_v23  ;;  %v3354_v29 = vpop.f32.mrb[39].mxu0  ;;  %2786 = sbr.rel (%p3236_p12) target bundleno = 4346 (0x10fa), region = 100 }
0x10f2   : > { %v3355_v32 = vadd.f32 %v3354_v29, %v3353_v14 }
0x10f3   : > { %v2775_v31 = vadd.f32 %v3352_v25, %v2734_v27  ;;  %v2737_v33 = vadd.f32 %v3333_v24, %v2506_v15 }
0x10f5   : > { %v2781_v34 = vadd.f32 %v2775_v31, %v5013_v28  ;;  %v2778_v45 = vadd.f32 %v3355_v32, %v2737_v33 }
0x10f7   : > { %v2782_v35 = vadd.f32 %v2778_v45, %v5016_v30  ;;  %2787 = vst [vmem:[%s4731_s19] sm:$0xff] (!%p3236_p12), %v2781_v34 }
0x10f9   : > { %2788 = vst [vmem:[%s4731_s19 + $0x8] sm:$0xff] %v2782_v35 }
0x10fa PF: > { %s5306_s12 = sld [smem:[#allocation25_spill]] }
0x1100   : > { %p3237_p1 = scmp.ne.s32.totalorder %s5306_s12, 1 }
0x1101   : > { %2795 = vadd.xlane.f32.xlu0 (!%p3237_p1), %v2781_v34  ;;  %s5307_s26 = sld [smem:[#allocation39_spill]] (!%p3237_p1)  ;;  %s5308_s22 = sld [smem:[#allocation40_spill]] (!%p3237_p1) }
0x1102   : > { %2792 = sbr.rel (%p3237_p1) target bundleno = 4669 (0x123d), region = 104 }
0x1105   : > { %2797 = vadd.xlane.f32.xlu0 (!%p3237_p1), %v2782_v35 }
0x1107   : > { %v3238_v42 = vld [vmem:[%s5307_s26] ss:$0 sm:$0xff] (!%p3237_p1) }
0x1108   : > { %v3239_v44 = vld [vmem:[%s5308_s22] ss:$0 sm:$0xff] (!%p3237_p1) }
0x118e   : > { %v2796_v58 = vpop.xlane.xlu0 %2795 }
0x118f   : > { %v2799_v47 = vmul.f32 0.0078125, %v2796_v58 }
0x1191   : > { %v2801_v36 = vsub.f32 %v2781_v34, %v2799_v47 }
0x1192   : > { %v2798_v28 = vpop.xlane.xlu0 %2797 }
0x1193   : > { %v2800_v5 = vmul.f32 0.0078125, %v2798_v28  ;;  %v2803_v37 = vmul.f32 %v2801_v36, %v2801_v36 }
0x1195   : > { %v2802_v30 = vsub.f32 %v2782_v35, %v2800_v5  ;;  %2805 = vadd.xlane.f32.xlu1 %v2803_v37 }
0x1197   : > { %v2804_v10 = vmul.f32 %v2802_v30, %v2802_v30 }
0x1199   : > { %2807 = vadd.xlane.f32.xlu1 %v2804_v10 }
0x1222   : > { %v2806_v38 = vpop.xlane.xlu1 %2805 }
0x1223   : > { %v2809_v39 = vmul.f32 0.0078125, %v2806_v38 }
0x1225   : > { %v2811_v40 = vadd.f32 1e-05, %v2809_v39 }
0x1226   : > { %v2808_v12 = vpop.xlane.xlu1 %2807 }
0x1227   : > { %3842 = vrsqrt.f32 %v2811_v40  ;;  %v2810_v16 = vmul.f32 0.0078125, %v2808_v12 }
0x1229   : > { %v2812_v41 = vadd.f32 1e-05, %v2810_v16 }
0x122b   : > { %3844 = vrsqrt.f32 %v2812_v41 }
0x1231   : > { %v3843_v22 = vpop.eup %3842 }
0x1232   : > { %v2815_v43 = vmul.f32 %v3843_v22, %v2801_v36 }
0x1234   : > { %v2823_v48 = vmul.f32 %v3238_v42, %v2815_v43 }
0x1235   : > { %v3845_v49 = vpop.eup %3844 }
0x1236   : > { %v2831_v50 = vadd.f32 %v3239_v44, %v2823_v48  ;;  %v2816_v21 = vmul.f32 %v3845_v49, %v2802_v30 }
0x1238   : > { %2833 = vst [vmem:[%s4731_s19] sm:$0xff] %v2831_v50  ;;  %v2824_v52 = vmul.f32 %v3238_v42, %v2816_v21 }
0x123a   : > { %v2832_v53 = vadd.f32 %v3239_v44, %v2824_v52 }
0x123c   : > { %2834 = vst [vmem:[%s4731_s19 + $0x8] sm:$0xff] %v2832_v53 }
0x123d PF: > { %s5309_s29 = sld [smem:[#allocation26_spill]]  ;;  %s5310_s9 = sld [smem:[#allocation42_spill]] }
0x123e   : > { %s2849_s10 = sshll.u32 %s4731_s19, 4  ;;  %s2836_s6 = scalar_lea.sflag [#allocation5], %s4684_s1  ;;  %s5147_s10 = int_to_ptr.vmem [resolvable:$true] %s2849_s10 }
0x123f   : > { %s4056_s5 = scalar_lea.vmem %s5147_s10, 256  ;;  %p5311_p6 = scmp.ne.s32.totalorder %s5286_s24, 0 }
0x1240   : > { %p4057_p7 = scmp.ne.s32.totalorder %s5147_s10, %s4056_s5  ;;  %s4213_s8 = smov [#allocation15]  }
0x1241   : > { %s4060_s11 = sshll.u32 %s4213_s8, 4  ;;  %s4061_s11 = int_to_ptr.vmem [resolvable:$false] %s4060_s11 }
0x1242   : > { %p4058_p0 = pnand %p4057_p7, %p5311_p6  ;;  %s4062_s0 = scalar_lea.vmem %s4061_s11, 512 }
0x1243   : > { %s3261_s15 = sshll.u32 %s5309_s29, 8  ;;  %p4063_p11 = scmp.lt.s32.totalorder %s5147_s10, %s4061_s11 }
0x1244   : > { %s5144_s18 = scalar_lea.hbm %s5310_s9, %s3261_s15  ;;  %p4059_p4 = pneg %p4058_p0 }
0x1245   : > { %p4064_p3 = scmp.lt.s32.totalorder %s4062_s0, %s4056_s5 }
0x1247   : > { %p4065_p5 = por %p4064_p3, %p4063_p11 }
0x1249   : > { %p4066_p13 = pnand %p4065_p5, %p4059_p4 }
0x124b   : > { %4069 = shalt.err (!%p4066_p13)
}
0x124c   : > { %s4070_s19 = scalar_lea.hbm %s5144_s18, 256  ;;  %s4074_s12 = scalar_lea.hbm %s5310_s9, 512 }
0x124d   : > { %p4071_p8 = scmp.ne.s32.totalorder %s5144_s18, %s4070_s19  ;;  %p4075_p2 = scmp.lt.u32.totalorder %s5144_s18, %s5310_s9 }
0x124e   : > { %p4076_p12 = scmp.lt.u32.totalorder %s4074_s12, %s4070_s19  ;;  %p4078_p7 = scmp.lt.u32.totalorder %s4070_s19, %s5144_s18 }
0x124f   : > { %p4072_p10 = pnand %p4071_p8, %p5311_p6 }
0x1250   : > { %p4077_p1 = por %p4076_p12, %p4075_p2 }
0x1251   : > { %p4073_p9 = pneg %p4072_p10 }
0x1252   : > { %p4079_p0 = por %p4078_p7, %p4077_p1 }
0x1254   : > { %p4080_p4 = pnand %p4079_p0, %p4073_p9 }
0x1256   : > { %4083 = shalt.err (!%p4080_p4)
}
0x1257   : > { %s4214_s26 = smov 128   ;;  %s4215_s3 = smov 8  }
0x1258   : > { %3512 = dma.vmem_to_hbm [thread:$0]  (%p5311_p6), %s5147_s10, 256, %s5144_s18, %s2836_s6, %s4214_s26, %s4214_s26, %s4215_s3  }
0x1259 PF: > { %s5312_s13 = sld [smem:[#allocation23_spill]]  ;;  %p3541_p11 = scmp.ge.s32.totalorder %s4190_s27, 2 }
0x125a   : > { %p5313_p3 = scmp.ne.s32.totalorder %s5287_s14, 0 }
0x125c   : > { %p3537_p5 = pnand %p3541_p11, %p5313_p3 }
0x125f   : > { %s2864_s22 = sand.u32 1, %s5312_s13  }
0x1260   : > { %s2865_s29 = scalar_lea.sflag [#allocation5], %s2864_s22 }
0x1261   : > { %4145 = dma.done.wait (!%p3537_p5), %s2865_s29, 256  }
0x1262   : > { %4147 = vsyncadd (!%p3537_p5), %s2865_s29, 4294967040  ;;  %s36_s27 = sadd.s32 1, %s4190_s27   ;;  %s5314_s17 = sld [smem:[#allocation21_spill]] }
0x1263   : > { %p33_p13 = scmp.ge.s32.totalorder %s36_s27, 6   ;;  %s5315_s18 = sld [smem:[#allocation22_spill]] }
0x1264   : > { %s5316_s19 = sld [smem:[#allocation30_spill]]  ;;  %s5317_s24 = sld [smem:[#allocation24_spill]] }
0x1265   : > { %s5318_s22 = sld [smem:[#allocation33_spill]]  ;;  %s5319_s1 = sld [smem:[#allocation27_spill]] }
0x1266   : > { %s5320_s15 = sld [smem:[#allocation28_spill]]  ;;  %s5321_s26 = sld [smem:[#allocation32_spill]] }
0x1267   : > { %s5322_s20 = smov %s4166_s21  ;;  %s5324_s23 = smov %s4182_s25 }
0x1268   :  { %35 = sbr.rel (!%p33_p13) target bundleno = 25 (0x19), region = 196 }
0x126a   : > { %s5323_s21 = smov %s5317_s24 }
0x126b   : > { %s5325_s24 = smov %s5319_s1 }
0x126c   : > { %s5326_s25 = smov %s5320_s15 }
0x126f   :  { %2870 = vsyncpa [#allocation4], 1 }
0x1270   :  { %2872 = vsyncpa [#allocation4 + $0x1], 1 }
0x1271   :  { %2873 = vsyncpa [#allocation7], 1 }
0x1272   :  { %2875 = vsyncpa [#allocation7 + $0x1], 1 }
0x1273   :  { %2876 = vsyncpa [#allocation10], 1 }
0x1274   :  { %2878 = vsyncpa [#allocation10 + $0x1], 1 }
0x1275   :  { %2879 = vsyncpa [#allocation13], 1 }
0x1276   :  { %2881 = vsyncpa [#allocation13 + $0x1], 1 }
0x1277   :  { %2882 = vsyncpa [#allocation5], 1 }
0x1278   :  { %2884 = vsyncpa [#allocation5 + $0x1], 1 }

</bundles_post_ra>
